<compile_context>
chip_gen: v7x
topology: tpu7x:2x2x1
jax: 0.10.0
libtpu: 0.0.40
codegen_flags: <defaults>
</compile_context>

<pallas_src>
import jax
import jax.numpy as jnp
from jax.experimental import pallas as pl
from jax.experimental.pallas import tpu as pltpu


# ----------------------------------------------------------------------------
# Bilinear-interpolation matrix (torch F.interpolate, align_corners=False)
# ----------------------------------------------------------------------------
def _interp_matrix(out_size, in_size):
    scale = in_size / out_size
    dst = jnp.arange(out_size, dtype=jnp.float32)
    src = jnp.clip((dst + 0.5) * scale - 0.5, 0.0, float(in_size - 1))
    i0 = jnp.floor(src).astype(jnp.int32)
    i1 = jnp.minimum(i0 + 1, in_size - 1)
    w1 = src - i0.astype(jnp.float32)
    w0 = 1.0 - w1
    rows = jnp.arange(out_size)
    m = jnp.zeros((out_size, in_size), jnp.float32)
    m = m.at[rows, i0].add(w0)
    m = m.at[rows, i1].add(w1)
    return m


# ----------------------------------------------------------------------------
# Fused kernel: (folded) 1x1 conv + ReLU + separable bilinear resize
# Grid = (batch, out_channel, out_h_tile); one (TILE_H, OUT_W) output slab per
# step, written lane-dense straight from the MXU result.
# ----------------------------------------------------------------------------
def _fused_kernel(w_ref, b_ref, x_ref, wy_ref, wxT_ref, o_ref):
    # w_ref:   (C_out, C_in)     SMEM  normalization-folded conv weights
    # b_ref:   (C_out,)          SMEM  normalization-folded bias
    # x_ref:   (C_in, H, W)      VMEM  raw 0..255-range image (one batch elem)
    # wy_ref:  (TILE_H, H)       VMEM  row-interp matrix tile for this step
    # wxT_ref: (W, OUT_W)        VMEM  col-interp matrix, pre-transposed
    # o_ref:   (TILE_H, OUT_W)   VMEM  output tile for this (n, c_out, h_tile)
    j = pl.program_id(1)                      # output channel
    c_in = x_ref.shape[0]

    # Tiny K=3 contraction -> VPU scalar multiply-adds (don't waste MXU).
    # (Recomputed per OUT_H tile: ~0.2 MFLOP, negligible vs. the resize matmul.)
    acc = x_ref[0] * w_ref[j, 0]
    for k in range(1, c_in):
        acc = acc + x_ref[k] * w_ref[j, k]
    feat = jnp.maximum(acc + b_ref[j], 0.0)                                   # (H, W)

    # Separable bilinear resize: Wy_tile @ (feat @ Wx^T), f32 MXU accumulate.
    tmp = jnp.dot(feat, wxT_ref[...], preferred_element_type=jnp.float32)     # (H, OUT_W)
    # Store the second matmul result directly into o_ref (no VMEM temporary).
    o_ref[...] = jnp.dot(wy_ref[...], tmp,
                         preferred_element_type=jnp.float32).astype(o_ref.dtype)


# ----------------------------------------------------------------------------
# WrappedModel.forward equivalent
# ----------------------------------------------------------------------------
def wrapped_model_forward(x_nhwc, mean, std, w_conv, b_conv,
                          out_h=1024, out_w=768, tile_h=256,
                          out_dtype=jnp.float32):
    assert out_h % tile_h == 0, (out_h, tile_h)

    # torch: data.permute(0, 3, 1, 2)  -- plain-JAX glue.
    # TODO(synk): at camera resolutions read the NHWC block in-kernel instead
    # of paying this extra HBM pass; negligible at 16x16x3.
    x_nchw = jnp.transpose(x_nhwc, (0, 3, 1, 2))
    if x_nchw.dtype != jnp.float32:
        x_nchw = x_nchw.astype(jnp.float32)
    n, c_in, h, w = x_nchw.shape
    c_out = w_conv.shape[0]

    # Fold /255, mean-subtract, std-divide into the 1x1-conv weights/bias.
    w_f = (w_conv / (255.0 * std)[None, :]).astype(jnp.float32)    # (C_out, C_in)
    b_f = (b_conv - w_conv @ (mean / std)).astype(jnp.float32)     # (C_out,)

    wy = _interp_matrix(out_h, h)                                  # (OUT_H, H)
    wxT = jnp.asarray(_interp_matrix(out_w, w).T)                  # (W, OUT_W)

    # TODO(synk): at realistic input resolutions the whole-image (C_in, H, W)
    # block must additionally be tiled over H with a K-accumulated row-resize
    # matmul (pl.when init) to stay under v7x's 32 MiB scoped VMEM default;
    # fine at these shapes (~2 MiB live).
    pred = pl.pallas_call(
        _fused_kernel,
        out_shape=jax.ShapeDtypeStruct((n, c_out, out_h, out_w), out_dtype),
        grid_spec=pltpu.PrefetchScalarGridSpec(
            num_scalar_prefetch=0,
            # 32 small steps (even 16/16 split across v7x's 2 TensorCores).
            grid=(n, c_out, out_h // tile_h),
            in_specs=[
                pl.BlockSpec(memory_space=pltpu.MemorySpace.SMEM),              # w_f
                pl.BlockSpec(memory_space=pltpu.MemorySpace.SMEM),              # b_f
                # x / wxT index maps independent of the OUT_H axis -> resident.
                pl.BlockSpec((None, c_in, h, w), lambda i, j, k: (i, 0, 0, 0)),  # x
                pl.BlockSpec((tile_h, h), lambda i, j, k: (k, 0)),               # wy tile
                pl.BlockSpec((w, out_w), lambda i, j, k: (0, 0)),                # wxT
            ],
            out_specs=pl.BlockSpec((None, None, tile_h, out_w),
                                   lambda i, j, k: (i, j, k, 0)),
        ),
        compiler_params=pltpu.CompilerParams(
            dimension_semantics=("parallel", "parallel", "parallel"),
            vmem_limit_bytes=32 * 1024 * 1024),
    )(w_f, b_f, x_nchw, wy, wxT)
    return pred


if __name__ == "__main__":
    key = jax.random.PRNGKey(0)
    n, h, w, c_in = 2, 16, 16, 3
    c_out = 4
    k1, k2, k3 = jax.random.split(key, 3)

    # synthetic uint8-range image, NHWC (what the torch call site feeds)
    x = jax.random.uniform(k1, (n, h, w, c_in), jnp.float32, 0.0, 255.0)

    mean = jnp.array([0.485, 0.456, 0.406], jnp.float32)
    std = jnp.array([0.229, 0.224, 0.225], jnp.float32)

    # TODO(synk): the real backbone passed into WrappedModel is external and
    # not reproducible here; a 1x1-conv + ReLU stand-in is used in its place.
    w_conv = jax.random.normal(k2, (c_out, c_in), jnp.float32) * 0.1
    b_conv = jax.random.normal(k3, (c_out,), jnp.float32) * 0.1

    # Default (semantics-preserving) f32 output.
    pred = wrapped_model_forward(x, mean, std, w_conv, b_conv)
    pred = jax.block_until_ready(pred)

    # bf16-output variant (halves HBM write bytes; looser tolerance).
    pred_bf16 = wrapped_model_forward(x, mean, std, w_conv, b_conv,
                                      out_dtype=jnp.bfloat16)
    pred_bf16 = jax.block_until_ready(pred_bf16)

    # pure-JAX reference (unfolded normalization, explicit interpolation)
    x_nchw = jnp.transpose(x, (0, 3, 1, 2))
    xn = (x_nchw / 255.0 - mean.reshape(1, c_in, 1, 1)) / std.reshape(1, c_in, 1, 1)
    feat_ref = jnp.maximum(
        jnp.einsum("oc,nchw->nohw", w_conv, xn) + b_conv.reshape(1, c_out, 1, 1), 0.0)
    wy_ref = _interp_matrix(1024, h)
    wx_ref = _interp_matrix(768, w)
    pred_ref = jnp.einsum("yh,nchw,xw->ncyx", wy_ref, feat_ref, wx_ref)

    assert pred.shape == (n, c_out, 1024, 768), pred.shape
    err = float(jnp.max(jnp.abs(pred - pred_ref)))
    assert err < 1e-3, err

    err_bf16 = float(jnp.max(jnp.abs(pred_bf16.astype(jnp.float32) - pred_ref)))
    assert err_bf16 < 5e-2, err_bf16

    print("KERNEL_OK")
</pallas_src>

<mosaic_0001>
module attributes {stable_mosaic.version = 11 : i64} {
  func.func @_fused_kernel(%arg0: i32, %arg1: i32, %arg2: i32, %arg3: memref<4x3xf32, #tpu.memory_space<smem>>, %arg4: memref<4xf32, #tpu.memory_space<smem>>, %arg5: memref<1x3x16x16xf32, #tpu.memory_space<vmem>>, %arg6: memref<256x16xf32, #tpu.memory_space<vmem>>, %arg7: memref<16x768xf32, #tpu.memory_space<vmem>>, %arg8: memref<1x1x256x768xf32, #tpu.memory_space<vmem>>) attributes {dimension_semantics = [#tpu.dimension_semantics<parallel>, #tpu.dimension_semantics<parallel>, #tpu.dimension_semantics<parallel>], iteration_bounds = array<i64: 2, 4, 4>, scalar_prefetch = 0 : i64, scratch_operands = 0 : i64, tpu.core_type = #tpu.core_type<tc>, window_params = [{transform_indices = @transform_0, window_bounds = array<i64: 4, 3>}, {transform_indices = @transform_1, window_bounds = array<i64: 4>}, {transform_indices = @transform_2, window_bounds = array<i64: 1, 3, 16, 16>}, {transform_indices = @transform_3, window_bounds = array<i64: 256, 16>}, {pipeline_mode = #tpu.pipeline_mode<synchronous>, transform_indices = @transform_4, window_bounds = array<i64: 16, 768>}, {transform_indices = @transform_5, window_bounds = array<i64: 1, 1, 256, 768>}]} {
    %c0 = arith.constant 0 : index
    %c0_0 = arith.constant 0 : index
    %c0_1 = arith.constant 0 : index
    %c0_2 = arith.constant 0 : index
    %0 = vector.load %arg5[%c0, %c0_0, %c0_1, %c0_2] : memref<1x3x16x16xf32, #tpu.memory_space<vmem>>, vector<1x1x16x16xf32>
    %1 = vector.shape_cast %0 : vector<1x1x16x16xf32> to vector<16x16xf32>
    %2 = arith.index_cast %arg1 : i32 to index
    %c0_3 = arith.constant 0 : index
    %3 = memref.load %arg3[%2, %c0_3] : memref<4x3xf32, #tpu.memory_space<smem>>
    %4 = vector.broadcast %3 : f32 to vector<16x16xf32>
    %5 = arith.mulf %1, %4 : vector<16x16xf32>
    %c0_4 = arith.constant 0 : index
    %c1 = arith.constant 1 : index
    %c0_5 = arith.constant 0 : index
    %c0_6 = arith.constant 0 : index
    %6 = vector.load %arg5[%c0_4, %c1, %c0_5, %c0_6] : memref<1x3x16x16xf32, #tpu.memory_space<vmem>>, vector<1x1x16x16xf32>
    %7 = vector.shape_cast %6 : vector<1x1x16x16xf32> to vector<16x16xf32>
    %8 = arith.index_cast %arg1 : i32 to index
    %c1_7 = arith.constant 1 : index
    %9 = memref.load %arg3[%8, %c1_7] : memref<4x3xf32, #tpu.memory_space<smem>>
    %10 = vector.broadcast %9 : f32 to vector<16x16xf32>
    %11 = arith.mulf %7, %10 : vector<16x16xf32>
    %12 = arith.addf %5, %11 : vector<16x16xf32>
    %c0_8 = arith.constant 0 : index
    %c2 = arith.constant 2 : index
    %c0_9 = arith.constant 0 : index
    %c0_10 = arith.constant 0 : index
    %13 = vector.load %arg5[%c0_8, %c2, %c0_9, %c0_10] : memref<1x3x16x16xf32, #tpu.memory_space<vmem>>, vector<1x1x16x16xf32>
    %14 = vector.shape_cast %13 : vector<1x1x16x16xf32> to vector<16x16xf32>
    %15 = arith.index_cast %arg1 : i32 to index
    %c2_11 = arith.constant 2 : index
    %16 = memref.load %arg3[%15, %c2_11] : memref<4x3xf32, #tpu.memory_space<smem>>
    %17 = vector.broadcast %16 : f32 to vector<16x16xf32>
    %18 = arith.mulf %14, %17 : vector<16x16xf32>
    %19 = arith.addf %12, %18 : vector<16x16xf32>
    %20 = arith.index_cast %arg1 : i32 to index
    %21 = memref.load %arg4[%20] : memref<4xf32, #tpu.memory_space<smem>>
    %22 = vector.broadcast %21 : f32 to vector<16x16xf32>
    %23 = arith.addf %19, %22 : vector<16x16xf32>
    %cst = arith.constant 0.000000e+00 : f32
    %24 = vector.broadcast %cst : f32 to vector<16x16xf32>
    %25 = arith.maximumf %23, %24 : vector<16x16xf32>
    %c0_12 = arith.constant 0 : index
    %c0_13 = arith.constant 0 : index
    %26 = vector.load %arg7[%c0_12, %c0_13] : memref<16x768xf32, #tpu.memory_space<vmem>>, vector<16x768xf32>
    %cst_14 = arith.constant dense<0.000000e+00> : vector<16x768xf32>
    %27 = tpu.matmul %25, %26, %cst_14 {dimension_numbers = #tpu.dot_dimension_numbers<[1], [0], [0], [1], [0, 0, 1, 1], [], []>} : vector<16x16xf32>, vector<16x768xf32>, vector<16x768xf32> -> vector<16x768xf32>
    %c0_15 = arith.constant 0 : index
    %c0_16 = arith.constant 0 : index
    %28 = vector.load %arg6[%c0_15, %c0_16] : memref<256x16xf32, #tpu.memory_space<vmem>>, vector<256x16xf32>
    %cst_17 = arith.constant dense<0.000000e+00> : vector<256x768xf32>
    %29 = tpu.matmul %28, %27, %cst_17 {dimension_numbers = #tpu.dot_dimension_numbers<[1], [0], [0], [1], [0, 0, 1, 1], [], []>} : vector<256x16xf32>, vector<16x768xf32>, vector<256x768xf32> -> vector<256x768xf32>
    %c0_18 = arith.constant 0 : index
    %c0_19 = arith.constant 0 : index
    %c0_20 = arith.constant 0 : index
    %c0_21 = arith.constant 0 : index
    %30 = vector.load %arg8[%c0_18, %c0_19, %c0_20, %c0_21] : memref<1x1x256x768xf32, #tpu.memory_space<vmem>>, vector<1x1x256x768xf32>
    %31 = vector.shape_cast %30 : vector<1x1x256x768xf32> to vector<256x768xf32>
    %32 = vector.shape_cast %29 : vector<256x768xf32> to vector<1x1x256x768xf32>
    tpu.vector_store %arg8[%c0_18, %c0_19, %c0_20, %c0_21], %32 {strides = array<i32>} : memref<1x1x256x768xf32, #tpu.memory_space<vmem>>, vector<1x1x256x768xf32>,
    return
  }
  func.func @transform_0(%arg0: i32, %arg1: i32, %arg2: i32) -> (i32, i32) {
    %c0_i32 = arith.constant 0 : i32
    %c0_i32_0 = arith.constant 0 : i32
    %c0_i32_1 = arith.constant 0 : i32
    return %c0_i32, %c0_i32_0 : i32, i32
  }
  func.func @transform_1(%arg0: i32, %arg1: i32, %arg2: i32) -> i32 {
    %c0_i32 = arith.constant 0 : i32
    %c0_i32_0 = arith.constant 0 : i32
    return %c0_i32 : i32
  }
  func.func @transform_2(%arg0: i32, %arg1: i32, %arg2: i32) -> (i32, i32, i32, i32) {
    %c0_i32 = arith.constant 0 : i32
    %c0_i32_0 = arith.constant 0 : i32
    %c0_i32_1 = arith.constant 0 : i32
    %c0_i32_2 = arith.constant 0 : i32
    return %arg0, %c0_i32, %c0_i32_0, %c0_i32_1 : i32, i32, i32, i32
  }
  func.func @transform_3(%arg0: i32, %arg1: i32, %arg2: i32) -> (i32, i32) {
    %c0_i32 = arith.constant 0 : i32
    %c0_i32_0 = arith.constant 0 : i32
    return %arg2, %c0_i32 : i32, i32
  }
  func.func @transform_4(%arg0: i32, %arg1: i32, %arg2: i32) -> (i32, i32) {
    %c0_i32 = arith.constant 0 : i32
    %c0_i32_0 = arith.constant 0 : i32
    %c0_i32_1 = arith.constant 0 : i32
    return %c0_i32, %c0_i32_0 : i32, i32
  }
  func.func @transform_5(%arg0: i32, %arg1: i32, %arg2: i32) -> (i32, i32, i32, i32) {
    %c0_i32 = arith.constant 0 : i32
    %c0_i32_0 = arith.constant 0 : i32
    return %arg0, %arg1, %arg2, %c0_i32 : i32, i32, i32, i32
  }
}

</mosaic_0001>

<bundles_post_ra>
// kernel: tpu_custom_call.1
= control target key start
LH: loop header
LB: loop body
LE: loop exit
PB: predicated region body
PF: predicated region fallthrough
CT: control target
= control target key end

     0   :  { %s3406_s0 = inlined_call_operand.hbm [shape: f32[4,3], index: 0, kind: input, shape index: {}]   ;;  %s3407_s1 = inlined_call_operand.hbm [shape: f32[4], index: 1, kind: input, shape index: {}]   ;;  %s3408_s2 = inlined_call_operand.hbm [shape: f32[2,3,16,16], index: 2, kind: input, shape index: {}]   ;;  %s3409_s3 = inlined_call_operand.vmem [shape: f32[1024,16], index: 3, kind: input, shape index: {}]   ;;  %s3410_s4 = inlined_call_operand.hbm [shape: f32[16,768], index: 4, kind: input, shape index: {}]   ;;  %s3411_s5 = inlined_call_operand.hbm [shape: f32[2,4,1024,768], index: 5, kind: output, shape index: {}]  }
   0x1   :  { %3425 = sst [smem:[#allocation25_spill]] %s3406_s0 }
   0x2   :  { %3426 = sst [smem:[#allocation26_spill]] %s3407_s1 }
   0x3   :  { %3427 = sst [smem:[#allocation27_spill]] %s3410_s4 }
   0x4   :  { %3428 = sst [smem:[#allocation28_spill]] %s3411_s5 }
   0x5   :  { %10 = vsyncpa [#allocation5], 0 }
   0x6   :  { %11 = vsyncpa [#allocation7], 0 }
   0x7   :  { %12 = vsyncpa [#allocation3], 0 }
   0x8   :  { %14 = vsyncpa [#allocation3 + $0x1], 0 }
   0x9   :  { %15 = vsyncpa [#allocation10], 0 }
   0xa   :  { %16 = vsyncpa [#allocation4], 0 }
   0xb   :  { %18 = vsyncpa [#allocation4 + $0x1], 0  ;;  %s2452_s18 = smov 0   ;;  %s2454_s19 = smov 0  }
   0xc   :  { %s2456_s20 = smov 0   ;;  %s2458_s21 = smov 0  }
   0xd   :  { %s2460_s22 = smov 0   ;;  %s2462_s23 = smov 0  }
   0xe   :  { %s2464_s24 = smov 0   ;;  %s2466_s25 = smov 0  }
   0xf   :  { %s2468_s26 = smov 0   ;;  %s2470_s27 = smov 0  }
  0x10   :  { %s2472_s28 = smov 0   ;;  %s2474_s29 = smov 0  }
  0x11   :  { %s2476_s30 = smov 0  }
  0x12 LB: > { %3429 = sst [smem:[#allocation17_spill]] %s2360_s18  ;;  %s1859_s6 = sadd.s32 4294967295, %s2408_s30   ;;  %s2408_s30 = sphi %s2476_s30, %s24_s30   ;;  %s2404_s29 = sphi %s2474_s29, %s3472_s29   ;;  %s2400_s28 = sphi %s2472_s28, %s3471_s28   ;;  %s2396_s27 = sphi %s2470_s27, %s3470_s27   ;;  %s2392_s26 = sphi %s2468_s26, %s3469_s26   ;;  %s2388_s25 = sphi %s2466_s25, %s3458_s25   ;;  %s2384_s24 = sphi %s2464_s24, %s3468_s24   ;;  %s2380_s23 = sphi %s2462_s23, %s3467_s23   ;;  %s2376_s22 = sphi %s2460_s22, %s3466_s22   ;;  %s2372_s21 = sphi %s2458_s21, %s3465_s21   ;;  %s2368_s20 = sphi %s2456_s20, %s3464_s20   ;;  %s2364_s19 = sphi %s2454_s19, %s3463_s19   ;;  %s2360_s18 = sphi %s2452_s18, %s3462_s18  }
  0x13   : > { %3430 = sst [smem:[#allocation18_spill]] %s2392_s26  ;;  %s1860_s7 = sadd.s32 4294967294, %s2408_s30  }
  0x14   : > { %3431 = sst [smem:[#allocation19_spill]] %s2400_s28  ;;  %p105_p0 = scmp.ne.s32.totalorder %s2376_s22, %s2372_s21 }
  0x15   : > { %p2518_p1 = scmp.eq.s32.totalorder %s1859_s6, 0  ;;  %p179_p2 = scmp.ne.s32.totalorder %s2368_s20, %s2364_s19 }
  0x16   : > { %p180_p4 = scmp.eq.s32.totalorder %s1859_s6, 31  ;;  %p185_p5 = scmp.ne.s32.totalorder %s2364_s19, %s2360_s18 }
  0x17   : > { %s3432_s8 = scalar_select %p2518_p1, 1, 0 }
  0x18   : > { %p2527_p3 = por %p2518_p1, %p105_p0  ;;  %p186_p6 = scmp.eq.s32.totalorder %s1860_s7, 31 }
  0x19   : > { %p2533_p7 = por %p180_p4, %p179_p2  ;;  %p1861_p8 = scmp.ge.s32.totalorder %s2408_s30, 1 }
  0x1a   : > { %s3433_s10 = scalar_select %p2527_p3, 1, 0 }
  0x1b   : > { %s3434_s11 = scalar_select %p2533_p7, 1, 0 }
  0x1c   : > { %p2538_p9 = por %p186_p6, %p185_p5  ;;  %p193_p10 = scmp.lt.s32.totalorder %s2408_s30, 33 }
  0x1d   : > { %3435 = sst [smem:[#allocation20_spill]] %s3434_s11  ;;  %s2410_s14 = smov [#allocation9]  }
  0x1e   : > { %s3436_s12 = scalar_select %p2538_p9, 1, 0 }
  0x1f   : > { %p2543_p11 = pnand %p1861_p8, %p193_p10  ;;  %s223_s15 = sshll.u32 %s2410_s14, 4  ;;  %s2549_s15 = int_to_ptr.vmem [resolvable:$true] %s223_s15 }
  0x20   : > { %3437 = sst [smem:[#allocation21_spill]] %s3436_s12  ;;  %s3440_s0 = sld [smem:[#allocation25_spill]] }
  0x21   : > { %p2034_p12 = pneg %p2543_p11 }
  0x23   : > { %p2553_p13 = pnand %p2034_p12, %p2518_p1 }
  0x25   : > { %p2176_p2 = pneg %p2553_p13 }
  0x26   : > { %s2174_s6 = scalar_lea.hbm %s3440_s0, 64 }
  0x27   : > { %p2175_p0 = scmp.ne.s32.totalorder %s3440_s0, %s2174_s6  ;;  %p2181_p6 = scmp.lt.u32.totalorder %s2174_s6, %s3440_s0 }
  0x29   : > { %p2177_p4 = pnand %p2176_p2, %p2175_p0 }
  0x2b   : > { %p2178_p5 = pneg %p2177_p4 }
  0x2d   : > { %p2183_p8 = pnand %p2181_p6, %p2178_p5 }
  0x2f   : > { %2186 = shalt.err (!%p2183_p8)
}
  0x30   : > { %s2411_s17 = smov [#allocation2]   ;;  %s3441_s1 = sld [smem:[#allocation26_spill]] }
  0x31   : > { %2037 = dma.hbm_to_smem (!%p2553_p13), %s3440_s0, 64, %s2411_s17, [#allocation5]  }
  0x36   : > { %s2187_s5 = scalar_lea.hbm %s3441_s1, 16 }
  0x37   : > { %p2188_p10 = scmp.ne.s32.totalorder %s3441_s1, %s2187_s5  ;;  %p2194_p4 = scmp.lt.u32.totalorder %s2187_s5, %s3441_s1 }
  0x39   : > { %p2190_p12 = pnand %p2188_p10, %p2176_p2 }
  0x3b   : > { %p2191_p0 = pneg %p2190_p12 }
  0x3d   : > { %p2196_p5 = pnand %p2194_p4, %p2191_p0 }
  0x3f   : > { %2199 = shalt.err (!%p2196_p5)
}
  0x40   : > { %s2412_s18 = smov [#allocation6]   ;;  %s3442_s4 = sld [smem:[#allocation27_spill]] }
  0x41   : > { %2040 = dma.hbm_to_smem (!%p2553_p13), %s3441_s1, 16, %s2412_s18, [#allocation7]  }
  0x46   : > { %s2200_s21 = scalar_lea.hbm %s3442_s4, 1536 }
  0x47   : > { %p2201_p6 = scmp.ne.s32.totalorder %s3442_s4, %s2200_s21  ;;  %p2207_p12 = scmp.lt.u32.totalorder %s2200_s21, %s3442_s4 }
  0x49   : > { %p2203_p8 = pnand %p2201_p6, %p2176_p2 }
  0x4b   : > { %p2204_p10 = pneg %p2203_p8 }
  0x4d   : > { %p2209_p0 = pnand %p2207_p12, %p2204_p10 }
  0x4f   : > { %2212 = shalt.err (!%p2209_p0)
}
  0x50   : > { %s2213_s6 = scalar_lea.vmem %s2549_s15, 1536  ;;  %p2221_p7 = scmp.lt.s32.totalorder %s2549_s15, %s2549_s15 }
  0x51   : > { %p2214_p4 = scmp.ne.s32.totalorder %s2549_s15, %s2213_s6  ;;  %p2222_p6 = scmp.lt.s32.totalorder %s2213_s6, %s2213_s6 }
  0x53   : > { %p2216_p5 = pnand %p2214_p4, %p2176_p2  ;;  %p2223_p8 = por %p2222_p6, %p2221_p7 }
  0x55   : > { %p2217_p9 = pneg %p2216_p5 }
  0x57   : > { %p2224_p3 = pnand %p2223_p8, %p2217_p9 }
  0x59   : > { %2227 = shalt.err (!%p2224_p3)
}
  0x5a   : > { %s2413_s18 = smov 768   ;;  %s2414_s14 = smov 48  }
  0x5b   : > { %2043 = dma.hbm_to_vmem [thread:$0]  (!%p2553_p13), %s3442_s4, 1536, %s2549_s15, [#allocation10], %s2413_s18, %s2413_s18, %s2414_s14  }
  0x5c   : > { %s36_s11 = sadd.s32 1, %s2396_s27  ;;  %s39_s21 = sadd.s32 1, %s2400_s28 }
  0x5d   : > { %p37_p3 = scmp.ge.s32.totalorder %s36_s11, 4  ;;  %s43_s9 = sadd.s32 1, %s2404_s29 }
  0x5e   : > { %s92_s7 = sadd.s32 1, %s2380_s23  ;;  %p99_p7 = scmp.ne.s32.totalorder %s2380_s23, %s2376_s22 }
  0x5f   : > { %s3474_s11 = smov (%p37_p3, %s36_s11), 0  ;;  %s3476_s21 = smov (!%p37_p3, %s39_s21), %s2400_s28 }
  0x60   : > { %3443 = sst [smem:[#allocation22_spill]] %s3474_s11  ;;  %p100_p9 = scmp.eq.s32.totalorder %s2408_s30, 0 }
  0x61   : > { %p41_p2 = scmp.ge.s32.totalorder %s3476_s21, 4  ;;  %s165_s16 = ssub.s32 %s2396_s27, %s3474_s11 }
  0x62   : > { %p101_p10 = por %p100_p9, %p99_p7  ;;  %p2055_p12 = scmp.lt.s32.totalorder %s2408_s30, 32 }
  0x63   : > { %s3478_s21 = smov (%p41_p2, %s3476_s21), 0  ;;  %s3480_s9 = smov (!%p41_p2, %s43_s9), %s2404_s29 }
  0x64   : > { %3444 = sst [smem:[#allocation23_spill]] %s3478_s21  ;;  %s163_s15 = ssub.s32 %s2400_s28, %s3478_s21 }
  0x65   : > { %s237_s5 = sand.u32 1, %s2380_s23   ;;  %p45_p13 = scmp.ge.s32.totalorder %s3480_s9, 2 }
  0x66   : > { %s2011_s12 = smul.u32 48, %s237_s5  ;;  %p2637_p0 = pnand %p2055_p12, %p101_p10 }
  0x67   : > { %s3482_s9 = smov (%p45_p13, %s3480_s9), 0  ;;  %s2012_s18 = smul.u32 768, %s2404_s29 }
  0x68   : > { %3446 = sst [smem:[#allocation24_spill]] %s3482_s9  ;;  %s89_s14 = ssub.s32 %s2404_s29, %s3482_s9 }
  0x69   : > { %s241_s17 = scalar_lea.vmem [#allocation8], %s2011_s12  ;;  %p90_p4 = scmp.eq.s32.totalorder %s89_s14, 0 }
  0x6a   : > { %s248_s26 = sshll.u32 %s241_s17, 4  ;;  %s164_s0 = sor.u32 %s163_s15, %s89_s14  ;;  %s2654_s26 = int_to_ptr.vmem [resolvable:$true] %s248_s26 }
  0x6b   : > { %s166_s1 = sor.u32 %s165_s16, %s164_s0  ;;  %s2649_s11 = scalar_lea.hbm %s3408_s2, %s2012_s18 }
  0x6c   : > { %s2652_s28 = scalar_select %p90_p4, %s2380_s23, %s92_s7  }
  0x6d   : > { %p167_p5 = scmp.eq.s32.totalorder %s166_s1, 0  ;;  %s3447_s9 = sadd.s32 1, %s2368_s20 }
  0x6e   : > { %s2661_s17 = scalar_lea.sflag [#allocation3], %s237_s5  ;;  %s2228_s0 = scalar_lea.hbm %s2649_s11, 768 }
  0x6f   : > { %s2659_s12 = scalar_select %p167_p5, %s2368_s20, %s3447_s9  }
  0x70   : > { %p2229_p6 = scmp.ne.s32.totalorder %s2649_s11, %s2228_s0  ;;  %p2230_p8 = pneg %p2637_p0 }
  0x71   : > { %s2233_s7 = scalar_lea.hbm %s3408_s2, 1536  ;;  %p2234_p9 = scmp.lt.u32.totalorder %s2649_s11, %s3408_s2 }
  0x72   : > { %p2231_p3 = pnand %p2230_p8, %p2229_p6  ;;  %p2235_p2 = scmp.lt.u32.totalorder %s2233_s7, %s2228_s0 }
  0x73   : > { %p2237_p12 = scmp.lt.u32.totalorder %s2228_s0, %s2649_s11 }
  0x74   : > { %p2232_p7 = pneg %p2231_p3  ;;  %p2236_p10 = por %p2235_p2, %p2234_p9 }
  0x76   : > { %p2238_p13 = por %p2237_p12, %p2236_p10 }
  0x78   : > { %p2239_p4 = pnand %p2238_p13, %p2232_p7 }
  0x7a   : > { %2242 = shalt.err (!%p2239_p4)
}
  0x7b   : > { %s2243_s9 = scalar_lea.vmem %s2654_s26, 768  ;;  %s2415_s15 = smov [#allocation8]  }
  0x7c   : > { %p2244_p5 = scmp.ne.s32.totalorder %s2654_s26, %s2243_s9  ;;  %s2248_s5 = sshll.u32 %s2415_s15, 4  ;;  %s2249_s5 = int_to_ptr.vmem [resolvable:$false] %s2248_s5 }
  0x7d   : > { %s2250_s18 = scalar_lea.vmem %s2249_s5, 1536  ;;  %p2251_p1 = scmp.lt.s32.totalorder %s2654_s26, %s2249_s5 }
  0x7e   : > { %p2246_p6 = pnand %p2244_p5, %p2230_p8  ;;  %p2252_p9 = scmp.lt.s32.totalorder %s2250_s18, %s2243_s9 }
  0x80   : > { %p2247_p3 = pneg %p2246_p6  ;;  %p2253_p2 = por %p2252_p9, %p2251_p1 }
  0x82   : > { %p2254_p10 = pnand %p2253_p2, %p2247_p3 }
  0x84   : > { %2257 = shalt.err (!%p2254_p10)
}
  0x85   : > { %s2416_s14 = smov 128   ;;  %s2417_s0 = smov 8  }
  0x86   : > { %2047 = dma.hbm_to_vmem [thread:$0]  (!%p2637_p0), %s2649_s11, 768, %s2654_s26, %s2661_s17, %s2416_s14, %s2416_s14, %s2417_s0  }
  0x87   : > { %269 = sbr.rel (%p2543_p11) target bundleno = 816 (0x330), region = 40  ;;  %p3448_p8 = scmp.ne.s32.totalorder (!%p2543_p11), %s3432_s8, 0 }
  0x8e   : > { %2339 = dma.done.wait (%p3448_p8), [#allocation5], 64  }
  0x8f   : > { %2341 = vsyncadd (%p3448_p8), [#allocation5], 4294967232 }
  0x90   : > { %2343 = dma.done.wait (%p3448_p8), [#allocation7], 16  }
  0x91   : > { %2345 = vsyncadd (%p3448_p8), [#allocation7], 4294967280  ;;  %s279_s4 = sand.u32 1, %s2376_s22   ;;  %p3449_p1 = scmp.ne.s32.totalorder %s3433_s10, 0 }
  0x92   : > { %s2013_s6 = smul.u32 48, %s279_s4  ;;  %s280_s11 = scalar_lea.sflag [#allocation3], %s279_s4 }
  0x94   : > { %s2700_s26 = scalar_lea.vmem [#allocation8], %s2013_s6 }
  0x95   : > { %2347 = dma.done.wait (%p3449_p1), %s280_s11, 768  }
  0x96   : > { %2349 = vsyncadd (%p3449_p1), %s280_s11, 4294966528 }
  0x97   : > { %2351 = dma.done.wait (%p3448_p8), [#allocation10], 1536  }
  0x98   : > { %2353 = vsyncadd (%p3448_p8), [#allocation10], 4294965760 }
  0x99   : > { %292 = sfence }
  0x9a   : > { %v361_v0 = vld [vmem:[#allocation9 + $0x8] sm:$0xff]  ;;  %v367_v1 = vld [vmem:[#allocation9 + $0x38] sm:$0xff]  ;;  %v360_v2 = vld [vmem:[#allocation9] sm:$0xff]  ;;  %s1873_s13 = sshll.u32 %s2388_s25, 7  ;;  %v2418_v5 = vmov 0.0   ;;  %s2715_s1 = sld [smem:[#allocation6 + %s2388_s25]] }
  0x9b   : > { %v1985_v3 = vpack.c.bf16 %v367_v1, %v361_v0  ;;  %v366_v4 = vld [vmem:[#allocation9 + $0x30] sm:$0xff]  ;;  %443 = vmatprep.mubr.f32.mxu0 %v2418_v5  ;;  %s330_s10 = sld [smem:[#allocation2 + %s1873_s13]]  ;;  %s337_s17 = sadd.s32 1, %s1873_s13  ;;  %520 = vmatprep.mubr.f32.mxu1 %v2418_v5  ;;  %v365_v7 = vld [vmem:[#allocation9 + $0x28] sm:$0xff]  ;;  %v371_v8 = vld [vmem:[#allocation9 + $0x58] sm:$0xff]  ;;  %vm372_vm0 = vcmask 130048  }
  0x9c   : > { %v1987_v6 = vpack.c.bf16 %v366_v4, %v360_v2  ;;  %s338_s8 = sld [smem:[#allocation2 + %s337_s17]]  ;;  %s347_s21 = sadd.s32 2, %s1873_s13  ;;  %v327_v9 = vld [vmem:[%s2700_s26] sm:$0xff]  ;;  %v328_v10 = vld [vmem:[%s2700_s26 + $0x8] sm:$0xff]  ;;  %v1993_v11 = vpack.c.bf16 %v371_v8, %v365_v7  ;;  %v1874_v16 = vld [vmem:[%s2700_s26 + $0x10] sm:$0xff] }
  0x9d   : > { %1986 = vmatprep.subr.bf16.mxu0 %v1985_v3  ;;  %s348_s7 = sld [smem:[#allocation2 + %s347_s21]]  ;;  %v363_v12 = vld [vmem:[#allocation9 + $0x18] sm:$0xff]  ;;  %v369_v13 = vld [vmem:[#allocation9 + $0x48] sm:$0xff]  ;;  %v362_v14 = vld [vmem:[#allocation9 + $0x10] sm:$0xff]  ;;  %s1871_s16 = sshll.u32 %s2384_s24, 5 }
  0x9e   : > { %1988 = vmatpush1.bf16.msra.mxu0 %v1987_v6  ;;  %v368_v15 = vld [vmem:[#allocation9 + $0x40] sm:$0xff]  ;;  %v1875_v17 = vld [vmem:[%s2700_s26 + $0x18] sm:$0xff]  ;;  %v1989_v18 = vpack.c.bf16 %v369_v13, %v363_v12  ;;  %v1877_v22 = vld [vmem:[%s2700_s26 + $0x28] sm:$0xff]  ;;  %p321_p11 = scmp.lt.s32.totalorder %s1871_s16, 127  ;;  %s317_s14 = sand.u32 1, %s2364_s19  }
  0x9f   : > { %1994 = vmatprep.subr.bf16.mxu0 %v1993_v11  ;;  %v1991_v19 = vpack.c.bf16 %v368_v15, %v362_v14  ;;  %v1876_v21 = vld [vmem:[%s2700_s26 + $0x20] sm:$0xff]  ;;  %s2014_s0 = smul.u32 1536, %s317_s14  ;;  %s3450_s6 = sld [smem:[#allocation18_spill]] }
  0xa0   : > { %1990 = vmatprep.subr.bf16.mxu1 %v1989_v18  ;;  %v355_v33 = vstv %s2715_s1  ;;  %v364_v36 = vld [vmem:[#allocation9 + $0x20] sm:$0xff]  ;;  %v370_v37 = vld [vmem:[#allocation9 + $0x50] sm:$0xff]  ;;  %s3484_s16 = smov (!%p321_p11, %s1871_s16), 127  ;;  %s2015_s11 = smul.u32 192, %s2384_s24 }
  0xa1   : > { %v331_v20 = vstv %s330_s10  ;;  %1992 = vmatpush1.bf16.msra.mxu1 %v1991_v19  ;;  %v1995_v40 = vpack.c.bf16 %v370_v37, %v364_v36  ;;  %s1872_s9 = sshll.u32 %s3484_s16, 3  ;;  %s3126_s4 = scalar_lea.vmem [#allocation11], %s2014_s0 }
  0xa2   : > { %v332_v23 = vmul.f32 %v331_v20, %v327_v9  ;;  %v339_v24 = vstv %s338_s8  ;;  %v333_v25 = vmul.f32 %v331_v20, %v328_v10  ;;  %s2739_s18 = scalar_lea.vmem %s3409_s3, %s1872_s9  ;;  %s2016_s26 = smul.u32 768, %s2388_s25 }
  0xa3   : > { %v340_v26 = vmul.f32 %v1874_v16, %v339_v24  ;;  %v349_v27 = vstv %s348_s7  ;;  %v341_v28 = vmul.f32 %v1875_v17, %v339_v24  ;;  %v2742_v57 = vld [vmem:[%s2739_s18 + $0x78] sm:$0xff]  ;;  %v2745_v58 = vld [vmem:[%s2739_s18] sm:$0xff]  ;;  %v2757_v0 = vld [vmem:[%s2739_s18 + $0x8] sm:$0xff]  ;;  %s3451_s25 = sld [smem:[#allocation20_spill]]  ;;  %s1720_s8 = sshll.u32 %s3126_s4, 4  ;;  %s3327_s8 = int_to_ptr.vmem [resolvable:$true] %s1720_s8 }
  0xa4   : > { %v350_v29 = vmul.f32 %v1876_v21, %v349_v27  ;;  %v351_v30 = vmul.f32 %v1877_v22, %v349_v27  ;;  %v2753_v62 = vld [vmem:[%s2739_s18 + $0x80] sm:$0xff]  ;;  %v2763_v1 = vld [vmem:[%s2739_s18 + $0x88] sm:$0xff]  ;;  %v2769_v2 = vld [vmem:[%s2739_s18 + $0x10] sm:$0xff]  ;;  %s1715_s10 = sadd.s32 %s2016_s26, %s2015_s11  ;;  %s3452_s1 = sld [smem:[#allocation28_spill]] }
  0xa5   : > { %v342_v31 = vadd.f32 %v340_v26, %v332_v23  ;;  %v343_v32 = vadd.f32 %v341_v28, %v333_v25  ;;  %v2775_v3 = vld [vmem:[%s2739_s18 + $0x90] sm:$0xff]  ;;  %v2781_v4 = vld [vmem:[%s2739_s18 + $0x18] sm:$0xff]  ;;  %v2793_v7 = vld [vmem:[%s2739_s18 + $0x20] sm:$0xff]  ;;  %s2017_s13 = smul.u32 3072, %s3450_s6  ;;  %s3333_s9 = scalar_lea.sflag [#allocation4], %s317_s14 }
  0xa6   : > { %v2787_v6 = vld [vmem:[%s2739_s18 + $0x98] sm:$0xff]  ;;  %v2799_v8 = vld [vmem:[%s2739_s18 + $0xa0] sm:$0xff]  ;;  %v2805_v9 = vld [vmem:[%s2739_s18 + $0x28] sm:$0xff]  ;;  %s2258_s15 = scalar_lea.vmem %s3327_s8, 24576  ;;  %s2419_s5 = smov [#allocation11]  }
  0xa7   : > { %v352_v34 = vadd.f32 %v350_v29, %v342_v31  ;;  %v353_v35 = vadd.f32 %v351_v30, %v343_v32  ;;  %v2811_v10 = vld [vmem:[%s2739_s18 + $0xa8] sm:$0xff]  ;;  %v2817_v11 = vld [vmem:[%s2739_s18 + $0x30] sm:$0xff]  ;;  %v2829_v13 = vld [vmem:[%s2739_s18 + $0x38] sm:$0xff]  ;;  %s1717_s24 = sadd.s32 %s2017_s13, %s1715_s10  ;;  %p2259_p0 = scmp.ne.s32.totalorder %s3327_s8, %s2258_s15 }
  0xa8   : > { %v2823_v12 = vld [vmem:[%s2739_s18 + $0xb0] sm:$0xff]  ;;  %v2835_v14 = vld [vmem:[%s2739_s18 + $0xb8] sm:$0xff]  ;;  %v2841_v15 = vld [vmem:[%s2739_s18 + $0x40] sm:$0xff]  ;;  %s1982_s17 = sshll.u32 %s1717_s24, 7 }
  0xa9   : > { %v356_v38 = vadd.f32 %v355_v33, %v352_v34  ;;  %v357_v39 = vadd.f32 %v355_v33, %v353_v35  ;;  %v2847_v16 = vld [vmem:[%s2739_s18 + $0xc0] sm:$0xff]  ;;  %v2853_v17 = vld [vmem:[%s2739_s18 + $0x48] sm:$0xff]  ;;  %v2865_v19 = vld [vmem:[%s2739_s18 + $0x50] sm:$0xff]  ;;  %p3453_p7 = scmp.ne.s32.totalorder %s3451_s25, 0 }
  0xaa   : > { %v2859_v18 = vld [vmem:[%s2739_s18 + $0xc8] sm:$0xff]  ;;  %v2871_v20 = vld [vmem:[%s2739_s18 + $0xd0] sm:$0xff]  ;;  %v2877_v21 = vld [vmem:[%s2739_s18 + $0x58] sm:$0xff]  ;;  %s3325_s16 = scalar_lea.hbm %s3452_s1, %s1982_s17 }
  0xab   : > { %v358_v41 = vmax.f32 %v356_v38, 0.0  ;;  %v359_v42 = vmax.f32 %v357_v39, 0.0  ;;  %v2883_v22 = vld [vmem:[%s2739_s18 + $0xd8] sm:$0xff]  ;;  %v2889_v23 = vld [vmem:[%s2739_s18 + $0x60] sm:$0xff]  ;;  %v2901_v25 = vld [vmem:[%s2739_s18 + $0x68] sm:$0xff]  ;;  %p2260_p12 = pnand %p2259_p0, %p3453_p7 }
  0xac   : > { %v2895_v24 = vld [vmem:[%s2739_s18 + $0xe0] sm:$0xff]  ;;  %v2907_v26 = vld [vmem:[%s2739_s18 + $0xe8] sm:$0xff]  ;;  %v2913_v27 = vld [vmem:[%s2739_s18 + $0x70] sm:$0xff] }
  0xad   : > { %1878 = vmatmul.mubr.msk.f32.vlgmr.msra.gmra.mrb[0].mxu0 %vm372_vm0, %v358_v41  ;;  %1880 = vmatmul.mubr.msk.f32.vlgmr.msra.gmra.mrb[0].mxu1 %vm372_vm0, %v358_v41  ;;  %v2919_v28 = vld [vmem:[%s2739_s18 + $0xf0] sm:$0xff]  ;;  %v2928_v29 = vld [vmem:[%s2739_s18 + $0xf8] sm:$0xff]  ;;  %p2261_p13 = pneg %p2260_p12  ;;  %s2262_s18 = sshll.u32 %s2419_s5, 4  ;;  %s2263_s18 = int_to_ptr.vmem [resolvable:$false] %s2262_s18 }
  0xae   : > { %449 = vmatprep.mubr.f32.mxu0 %v2418_v5  ;;  %1996 = vmatpush1.bf16.msra.mxu0 %v1995_v40  ;;  %s2264_s0 = scalar_lea.vmem %s2263_s18, 49152  ;;  %p2265_p4 = scmp.lt.s32.totalorder %s3327_s8, %s2263_s18 }
  0xaf   : > { %526 = vmatprep.mubr.f32.mxu1 %v2418_v5  ;;  %p2266_p5 = scmp.lt.s32.totalorder %s2264_s0, %s2258_s15 }
  0xb1   : > { %1879 = vmatmul.mubr.msk.f32.gmra.mrb[2].mxu0 %vm372_vm0, %v359_v42  ;;  %1881 = vmatmul.mubr.msk.f32.gmra.mrb[2].mxu1 %vm372_vm0, %v359_v42  ;;  %p2267_p6 = por %p2266_p5, %p2265_p4 }
  0xb2   : > { %597 = vmatprep.mubr.f32.mxu0 %v2418_v5  ;;  %892 = vmatprep.mubr.f32.mxu1 %v2418_v5 }
  0xb3   : > { %p2268_p3 = pnand %p2267_p6, %p2261_p13 }
  0xb5   : > { %1882 = vmatmul.mubr.msk.f32.vlgmr.msra.gmra.mrb[4].mxu0 %vm372_vm0, %v358_v41 }
  0xb6   : > { %603 = vmatprep.mubr.f32.mxu0 %v2418_v5 }
  0xb9   : > { %1883 = vmatmul.mubr.msk.f32.gmra.mrb[6].mxu0 %vm372_vm0, %v359_v42 }
  0xba   : > { %802 = vmatprep.mubr.f32.mxu0 %v2418_v5 }
 0x180   : > { %v445_v43 = vpop.f32.mrb[0].mxu0  ;;  %v522_v44 = vpop.f32.mrb[0].mxu1 }
 0x181   : > { %v447_v45 = vpop.f32.mrb[1].mxu0  ;;  %v524_v46 = vpop.f32.mrb[1].mxu1 }
 0x184   : > { %v451_v47 = vpop.f32.mrb[2].mxu0  ;;  %v528_v48 = vpop.f32.mrb[2].mxu1 }
 0x185   : > { %v1999_v49 = vpack.c.bf16 %v451_v47, %v445_v43  ;;  %v453_v50 = vpop.f32.mrb[3].mxu0  ;;  %v2003_v51 = vpack.c.bf16 %v528_v48, %v522_v44  ;;  %v530_v52 = vpop.f32.mrb[3].mxu1 }
 0x186   : > { %v1997_v53 = vpack.c.bf16 %v453_v50, %v447_v45  ;;  %v2001_v54 = vpack.c.bf16 %v530_v52, %v524_v46 }
 0x188   : > { %v599_v55 = vpop.f32.mrb[4].mxu0  ;;  %1998 = vmatprep.subr.bf16.mxu0 %v1997_v53  ;;  %2009 = vmatprep.subr.bf16.mxu1 %v1997_v53 }
 0x189   : > { %v601_v56 = vpop.f32.mrb[5].mxu0  ;;  %2000 = vmatpush1.bf16.msra.mxu0 %v1999_v49  ;;  %2010 = vmatpush1.bf16.msra.mxu1 %v1999_v49 }
 0x18a   : > { %2002 = vmatprep.subr.bf16.mxu0 %v2001_v54 }
 0x18c   : > { %v605_v59 = vpop.f32.mrb[6].mxu0  ;;  %1899 = vmatmul.mubr.msk.f32.vlgmr.msra.gmra.mrb[4].mxu1 %vm372_vm0, %v2742_v57  ;;  %1884 = vmatmul.mubr.msk.f32.vlgmr.msra.gmra.mrb[8].mxu0 %vm372_vm0, %v2745_v58 }
 0x18d   : > { %v2007_v60 = vpack.c.bf16 %v605_v59, %v599_v55  ;;  %v607_v61 = vpop.f32.mrb[7].mxu0  ;;  %898 = vmatprep.mubr.f32.mxu1 %v2418_v5  ;;  %2004 = vmatpush1.bf16.msra.mxu0 %v2003_v51 }
 0x18e   : > { %v2005_v63 = vpack.c.bf16 %v607_v61, %v601_v56  ;;  %808 = vmatprep.mubr.f32.mxu0 %v2418_v5 }
 0x190   : > { %2006 = vmatprep.subr.bf16.mxu1 %v2005_v63  ;;  %1900 = vmatmul.mubr.msk.f32.gmra.mrb[6].mxu1 %vm372_vm0, %v2753_v62 }
 0x191   : > { %2008 = vmatpush1.bf16.msra.mxu1 %v2007_v60  ;;  %904 = vmatprep.mubr.f32.mxu1 %v2418_v5 }
 0x192   : > { %1885 = vmatmul.mubr.msk.f32.gmra.mrb[10].mxu0 %vm372_vm0, %v2757_v0 }
 0x193   : > { %814 = vmatprep.mubr.f32.mxu0 %v2418_v5 }
 0x194   : > { %1901 = vmatmul.mubr.msk.f32.gmra.mrb[8].mxu1 %vm372_vm0, %v2763_v1 }
 0x195   : > { %910 = vmatprep.mubr.f32.mxu1 %v2418_v5 }
 0x196   : > { %1886 = vmatmul.mubr.msk.f32.gmra.mrb[12].mxu0 %vm372_vm0, %v2769_v2 }
 0x197   : > { %820 = vmatprep.mubr.f32.mxu0 %v2418_v5 }
 0x198   : > { %1902 = vmatmul.mubr.msk.f32.gmra.mrb[10].mxu1 %vm372_vm0, %v2775_v3 }
 0x199   : > { %916 = vmatprep.mubr.f32.mxu1 %v2418_v5 }
 0x19a   : > { %1887 = vmatmul.mubr.msk.f32.gmra.mrb[14].mxu0 %vm372_vm0, %v2781_v4 }
 0x19b   : > { %826 = vmatprep.mubr.f32.mxu0 %v2418_v5 }
 0x19c   : > { %1903 = vmatmul.mubr.msk.f32.gmra.mrb[12].mxu1 %vm372_vm0, %v2787_v6 }
 0x19d   : > { %922 = vmatprep.mubr.f32.mxu1 %v2418_v5 }
 0x19e   : > { %1888 = vmatmul.mubr.msk.f32.gmra.mrb[16].mxu0 %vm372_vm0, %v2793_v7 }
 0x19f   : > { %832 = vmatprep.mubr.f32.mxu0 %v2418_v5 }
 0x1a0   : > { %1904 = vmatmul.mubr.msk.f32.gmra.mrb[14].mxu1 %vm372_vm0, %v2799_v8 }
 0x1a1   : > { %928 = vmatprep.mubr.f32.mxu1 %v2418_v5 }
 0x1a2   : > { %1889 = vmatmul.mubr.msk.f32.gmra.mrb[18].mxu0 %vm372_vm0, %v2805_v9 }
 0x1a3   : > { %838 = vmatprep.mubr.f32.mxu0 %v2418_v5 }
 0x1a4   : > { %1905 = vmatmul.mubr.msk.f32.gmra.mrb[16].mxu1 %vm372_vm0, %v2811_v10 }
 0x1a5   : > { %934 = vmatprep.mubr.f32.mxu1 %v2418_v5 }
 0x1a6   : > { %1890 = vmatmul.mubr.msk.f32.gmra.mrb[20].mxu0 %vm372_vm0, %v2817_v11 }
 0x1a7   : > { %844 = vmatprep.mubr.f32.mxu0 %v2418_v5 }
 0x1a8   : > { %1906 = vmatmul.mubr.msk.f32.gmra.mrb[18].mxu1 %vm372_vm0, %v2823_v12 }
 0x1a9   : > { %940 = vmatprep.mubr.f32.mxu1 %v2418_v5 }
 0x1aa   : > { %1891 = vmatmul.mubr.msk.f32.gmra.mrb[22].mxu0 %vm372_vm0, %v2829_v13 }
 0x1ab   : > { %850 = vmatprep.mubr.f32.mxu0 %v2418_v5 }
 0x1ac   : > { %1907 = vmatmul.mubr.msk.f32.gmra.mrb[20].mxu1 %vm372_vm0, %v2835_v14 }
 0x1ad   : > { %946 = vmatprep.mubr.f32.mxu1 %v2418_v5 }
 0x1ae   : > { %1892 = vmatmul.mubr.msk.f32.gmra.mrb[24].mxu0 %vm372_vm0, %v2841_v15 }
 0x1af   : > { %856 = vmatprep.mubr.f32.mxu0 %v2418_v5 }
 0x1b0   : > { %1908 = vmatmul.mubr.msk.f32.gmra.mrb[22].mxu1 %vm372_vm0, %v2847_v16 }
 0x1b1   : > { %952 = vmatprep.mubr.f32.mxu1 %v2418_v5 }
 0x1b2   : > { %1893 = vmatmul.mubr.msk.f32.gmra.mrb[26].mxu0 %vm372_vm0, %v2853_v17 }
 0x1b3   : > { %862 = vmatprep.mubr.f32.mxu0 %v2418_v5 }
 0x1b4   : > { %1909 = vmatmul.mubr.msk.f32.gmra.mrb[24].mxu1 %vm372_vm0, %v2859_v18 }
 0x1b5   : > { %958 = vmatprep.mubr.f32.mxu1 %v2418_v5 }
 0x1b6   : > { %1894 = vmatmul.mubr.msk.f32.gmra.mrb[28].mxu0 %vm372_vm0, %v2865_v19 }
 0x1b7   : > { %868 = vmatprep.mubr.f32.mxu0 %v2418_v5 }
 0x1b8   : > { %1910 = vmatmul.mubr.msk.f32.gmra.mrb[26].mxu1 %vm372_vm0, %v2871_v20 }
 0x1b9   : > { %964 = vmatprep.mubr.f32.mxu1 %v2418_v5 }
 0x1ba   : > { %1895 = vmatmul.mubr.msk.f32.gmra.mrb[30].mxu0 %vm372_vm0, %v2877_v21 }
 0x1bb   : > { %874 = vmatprep.mubr.f32.mxu0 %v2418_v5 }
 0x1bc   : > { %1911 = vmatmul.mubr.msk.f32.gmra.mrb[28].mxu1 %vm372_vm0, %v2883_v22 }
 0x1bd   : > { %970 = vmatprep.mubr.f32.mxu1 %v2418_v5 }
 0x1be   : > { %1896 = vmatmul.mubr.msk.f32.gmra.mrb[32].mxu0 %vm372_vm0, %v2889_v23 }
 0x1bf   : > { %880 = vmatprep.mubr.f32.mxu0 %v2418_v5 }
 0x1c0   : > { %1912 = vmatmul.mubr.msk.f32.gmra.mrb[30].mxu1 %vm372_vm0, %v2895_v24 }
 0x1c1   : > { %976 = vmatprep.mubr.f32.mxu1 %v2418_v5 }
 0x1c2   : > { %1897 = vmatmul.mubr.msk.f32.gmra.mrb[34].mxu0 %vm372_vm0, %v2901_v25 }
 0x1c3   : > { %886 = vmatprep.mubr.f32.mxu0 %v2418_v5 }
 0x1c4   : > { %1913 = vmatmul.mubr.msk.f32.gmra.mrb[32].mxu1 %vm372_vm0, %v2907_v26 }
 0x1c5   : > { %982 = vmatprep.mubr.f32.mxu1 %v2418_v5 }
 0x1c6   : > { %1898 = vmatmul.mubr.msk.f32.gmra.mrb[36].mxu0 %vm372_vm0, %v2913_v27 }
 0x1c7   : > { %1059 = vmatprep.mubr.f32.mxu0 %v2418_v5 }
 0x1c8   : > { %1914 = vmatmul.mubr.msk.f32.gmra.mrb[34].mxu1 %vm372_vm0, %v2919_v28 }
 0x1c9   : > { %988 = vmatprep.mubr.f32.mxu1 %v2418_v5 }
 0x1ca   : > { %1916 = vmatmul.mubr.msk.f32.vlgmr.msra.gmra.mrb[38].mxu0 %vm372_vm0, %v2745_v58 }
 0x1cb   : > { %1065 = vmatprep.mubr.f32.mxu0 %v2418_v5 }
 0x1cc   : > { %1915 = vmatmul.mubr.msk.f32.gmra.mrb[36].mxu1 %vm372_vm0, %v2928_v29 }
 0x1cd   : > { %1316 = vmatprep.mubr.f32.mxu1 %v2418_v5 }
 0x1ce   : > { %1917 = vmatmul.mubr.msk.f32.gmra.mrb[40].mxu0 %vm372_vm0, %v2757_v0 }
 0x1cf   : > { %1071 = vmatprep.mubr.f32.mxu0 %v2418_v5 }
 0x1d0   : > { %1948 = vmatmul.mubr.msk.f32.vlgmr.msra.gmra.mrb[38].mxu1 %vm372_vm0, %v2745_v58 }
 0x1d1   : > { %1322 = vmatprep.mubr.f32.mxu1 %v2418_v5 }
 0x1d2   : > { %1918 = vmatmul.mubr.msk.f32.gmra.mrb[42].mxu0 %vm372_vm0, %v2769_v2 }
 0x1d3   : > { %1077 = vmatprep.mubr.f32.mxu0 %v2418_v5 }
 0x1d4   : > { %1949 = vmatmul.mubr.msk.f32.gmra.mrb[40].mxu1 %vm372_vm0, %v2757_v0 }
 0x1d5   : > { %1328 = vmatprep.mubr.f32.mxu1 %v2418_v5 }
 0x1d6   : > { %1919 = vmatmul.mubr.msk.f32.gmra.mrb[44].mxu0 %vm372_vm0, %v2781_v4 }
 0x1d7   : > { %1083 = vmatprep.mubr.f32.mxu0 %v2418_v5 }
 0x1d8   : > { %1950 = vmatmul.mubr.msk.f32.gmra.mrb[42].mxu1 %vm372_vm0, %v2769_v2 }
 0x1d9   : > { %1334 = vmatprep.mubr.f32.mxu1 %v2418_v5 }
 0x1da   : > { %1920 = vmatmul.mubr.msk.f32.gmra.mrb[46].mxu0 %vm372_vm0, %v2793_v7 }
 0x1db   : > { %1089 = vmatprep.mubr.f32.mxu0 %v2418_v5 }
 0x1dc   : > { %1951 = vmatmul.mubr.msk.f32.gmra.mrb[44].mxu1 %vm372_vm0, %v2781_v4 }
 0x1dd   : > { %1340 = vmatprep.mubr.f32.mxu1 %v2418_v5 }
 0x1de   : > { %1921 = vmatmul.mubr.msk.f32.gmra.mrb[48].mxu0 %vm372_vm0, %v2805_v9 }
 0x1df   : > { %1095 = vmatprep.mubr.f32.mxu0 %v2418_v5 }
 0x1e0   : > { %1952 = vmatmul.mubr.msk.f32.gmra.mrb[46].mxu1 %vm372_vm0, %v2793_v7 }
 0x1e1   : > { %1346 = vmatprep.mubr.f32.mxu1 %v2418_v5 }
 0x1e2   : > { %1922 = vmatmul.mubr.msk.f32.gmra.mrb[50].mxu0 %vm372_vm0, %v2817_v11 }
 0x1e3   : > { %1101 = vmatprep.mubr.f32.mxu0 %v2418_v5 }
 0x1e4   : > { %1953 = vmatmul.mubr.msk.f32.gmra.mrb[48].mxu1 %vm372_vm0, %v2805_v9 }
 0x1e5   : > { %1352 = vmatprep.mubr.f32.mxu1 %v2418_v5 }
 0x1e6   : > { %1923 = vmatmul.mubr.msk.f32.gmra.mrb[52].mxu0 %vm372_vm0, %v2829_v13 }
 0x1e7   : > { %1107 = vmatprep.mubr.f32.mxu0 %v2418_v5 }
 0x1e8   : > { %1954 = vmatmul.mubr.msk.f32.gmra.mrb[50].mxu1 %vm372_vm0, %v2817_v11 }
 0x1e9   : > { %1358 = vmatprep.mubr.f32.mxu1 %v2418_v5 }
 0x1ea   : > { %1924 = vmatmul.mubr.msk.f32.gmra.mrb[54].mxu0 %vm372_vm0, %v2841_v15 }
 0x1eb   : > { %1113 = vmatprep.mubr.f32.mxu0 %v2418_v5 }
 0x1ec   : > { %1955 = vmatmul.mubr.msk.f32.gmra.mrb[52].mxu1 %vm372_vm0, %v2829_v13 }
 0x1ed   : > { %1364 = vmatprep.mubr.f32.mxu1 %v2418_v5 }
 0x1ee   : > { %1925 = vmatmul.mubr.msk.f32.gmra.mrb[56].mxu0 %vm372_vm0, %v2853_v17 }
 0x1ef   : > { %1119 = vmatprep.mubr.f32.mxu0 %v2418_v5 }
 0x1f0   : > { %1956 = vmatmul.mubr.msk.f32.gmra.mrb[54].mxu1 %vm372_vm0, %v2841_v15 }
 0x1f1   : > { %1370 = vmatprep.mubr.f32.mxu1 %v2418_v5 }
 0x1f2   : > { %1926 = vmatmul.mubr.msk.f32.gmra.mrb[58].mxu0 %vm372_vm0, %v2865_v19 }
 0x1f3   : > { %1125 = vmatprep.mubr.f32.mxu0 %v2418_v5 }
 0x1f4   : > { %1957 = vmatmul.mubr.msk.f32.gmra.mrb[56].mxu1 %vm372_vm0, %v2853_v17 }
 0x1f5   : > { %1376 = vmatprep.mubr.f32.mxu1 %v2418_v5 }
 0x1f6   : > { %1927 = vmatmul.mubr.msk.f32.gmra.mrb[60].mxu0 %vm372_vm0, %v2877_v21 }
 0x1f7   : > { %1131 = vmatprep.mubr.f32.mxu0 %v2418_v5 }
 0x1f8   : > { %1958 = vmatmul.mubr.msk.f32.gmra.mrb[58].mxu1 %vm372_vm0, %v2865_v19 }
 0x1f9   : > { %1382 = vmatprep.mubr.f32.mxu1 %v2418_v5 }
 0x1fa   : > { %1928 = vmatmul.mubr.msk.f32.gmra.mrb[62].mxu0 %vm372_vm0, %v2889_v23 }
 0x1fb   : > { %1137 = vmatprep.mubr.f32.mxu0 %v2418_v5 }
 0x1fc   : > { %1959 = vmatmul.mubr.msk.f32.gmra.mrb[60].mxu1 %vm372_vm0, %v2877_v21 }
 0x1fd   : > { %1388 = vmatprep.mubr.f32.mxu1 %v2418_v5 }
 0x1fe   : > { %1929 = vmatmul.mubr.msk.f32.gmra.mrb[64].mxu0 %vm372_vm0, %v2901_v25 }
 0x1ff   : > { %1143 = vmatprep.mubr.f32.mxu0 %v2418_v5 }
 0x200   : > { %1960 = vmatmul.mubr.msk.f32.gmra.mrb[62].mxu1 %vm372_vm0, %v2889_v23 }
 0x201   : > { %1394 = vmatprep.mubr.f32.mxu1 %v2418_v5 }
 0x202   : > { %1930 = vmatmul.mubr.msk.f32.gmra.mrb[66].mxu0 %vm372_vm0, %v2913_v27 }
 0x203   : > { %1149 = vmatprep.mubr.f32.mxu0 %v2418_v5 }
 0x204   : > { %1961 = vmatmul.mubr.msk.f32.gmra.mrb[64].mxu1 %vm372_vm0, %v2901_v25 }
 0x205   : > { %1400 = vmatprep.mubr.f32.mxu1 %v2418_v5 }
 0x206   : > { %1931 = vmatmul.mubr.msk.f32.gmra.mrb[68].mxu0 %vm372_vm0, %v2742_v57 }
 0x207   : > { %1155 = vmatprep.mubr.f32.mxu0 %v2418_v5 }
 0x208   : > { %1962 = vmatmul.mubr.msk.f32.gmra.mrb[66].mxu1 %vm372_vm0, %v2913_v27 }
 0x209   : > { %1406 = vmatprep.mubr.f32.mxu1 %v2418_v5 }
 0x20a   : > { %1932 = vmatmul.mubr.msk.f32.gmra.mrb[70].mxu0 %vm372_vm0, %v2753_v62 }
 0x20b   : > { %1161 = vmatprep.mubr.f32.mxu0 %v2418_v5 }
 0x20c   : > { %1963 = vmatmul.mubr.msk.f32.gmra.mrb[68].mxu1 %vm372_vm0, %v2742_v57 }
 0x20d   : > { %1412 = vmatprep.mubr.f32.mxu1 %v2418_v5 }
 0x20e   : > { %1933 = vmatmul.mubr.msk.f32.gmra.mrb[72].mxu0 %vm372_vm0, %v2763_v1 }
 0x20f   : > { %1167 = vmatprep.mubr.f32.mxu0 %v2418_v5 }
 0x210   : > { %1964 = vmatmul.mubr.msk.f32.gmra.mrb[70].mxu1 %vm372_vm0, %v2753_v62 }
 0x211   : > { %1418 = vmatprep.mubr.f32.mxu1 %v2418_v5 }
 0x212   : > { %1934 = vmatmul.mubr.msk.f32.gmra.mrb[74].mxu0 %vm372_vm0, %v2775_v3 }
 0x213   : > { %1173 = vmatprep.mubr.f32.mxu0 %v2418_v5 }
 0x214   : > { %1965 = vmatmul.mubr.msk.f32.gmra.mrb[72].mxu1 %vm372_vm0, %v2763_v1 }
 0x215   : > { %1424 = vmatprep.mubr.f32.mxu1 %v2418_v5 }
 0x216   : > { %1935 = vmatmul.mubr.msk.f32.gmra.mrb[76].mxu0 %vm372_vm0, %v2787_v6 }
 0x217   : > { %1179 = vmatprep.mubr.f32.mxu0 %v2418_v5 }
 0x218   : > { %1966 = vmatmul.mubr.msk.f32.gmra.mrb[74].mxu1 %vm372_vm0, %v2775_v3 }
 0x219   : > { %1430 = vmatprep.mubr.f32.mxu1 %v2418_v5 }
 0x21a   : > { %1936 = vmatmul.mubr.msk.f32.gmra.mrb[78].mxu0 %vm372_vm0, %v2799_v8 }
 0x21b   : > { %1185 = vmatprep.mubr.f32.mxu0 %v2418_v5 }
 0x21c   : > { %1967 = vmatmul.mubr.msk.f32.gmra.mrb[76].mxu1 %vm372_vm0, %v2787_v6 }
 0x21d   : > { %1436 = vmatprep.mubr.f32.mxu1 %v2418_v5 }
 0x21e   : > { %1937 = vmatmul.mubr.msk.f32.gmra.mrb[80].mxu0 %vm372_vm0, %v2811_v10 }
 0x21f   : > { %1191 = vmatprep.mubr.f32.mxu0 %v2418_v5 }
 0x220   : > { %1968 = vmatmul.mubr.msk.f32.gmra.mrb[78].mxu1 %vm372_vm0, %v2799_v8 }
 0x221   : > { %1442 = vmatprep.mubr.f32.mxu1 %v2418_v5 }
 0x222   : > { %1938 = vmatmul.mubr.msk.f32.gmra.mrb[82].mxu0 %vm372_vm0, %v2823_v12 }
 0x223   : > { %1197 = vmatprep.mubr.f32.mxu0 %v2418_v5 }
 0x224   : > { %1969 = vmatmul.mubr.msk.f32.gmra.mrb[80].mxu1 %vm372_vm0, %v2811_v10 }
 0x225   : > { %1448 = vmatprep.mubr.f32.mxu1 %v2418_v5 }
 0x226   : > { %1939 = vmatmul.mubr.msk.f32.gmra.mrb[84].mxu0 %vm372_vm0, %v2835_v14 }
 0x227   : > { %1203 = vmatprep.mubr.f32.mxu0 %v2418_v5 }
 0x228   : > { %1970 = vmatmul.mubr.msk.f32.gmra.mrb[82].mxu1 %vm372_vm0, %v2823_v12 }
 0x229   : > { %1454 = vmatprep.mubr.f32.mxu1 %v2418_v5 }
 0x22a   : > { %1940 = vmatmul.mubr.msk.f32.gmra.mrb[86].mxu0 %vm372_vm0, %v2847_v16 }
 0x22b   : > { %1209 = vmatprep.mubr.f32.mxu0 %v2418_v5 }
 0x22c   : > { %1971 = vmatmul.mubr.msk.f32.gmra.mrb[84].mxu1 %vm372_vm0, %v2835_v14 }
 0x22d   : > { %1460 = vmatprep.mubr.f32.mxu1 %v2418_v5 }
 0x22e   : > { %1941 = vmatmul.mubr.msk.f32.gmra.mrb[88].mxu0 %vm372_vm0, %v2859_v18 }
 0x22f   : > { %1215 = vmatprep.mubr.f32.mxu0 %v2418_v5 }
 0x230   : > { %1972 = vmatmul.mubr.msk.f32.gmra.mrb[86].mxu1 %vm372_vm0, %v2847_v16 }
 0x231   : > { %1466 = vmatprep.mubr.f32.mxu1 %v2418_v5 }
 0x232   : > { %1942 = vmatmul.mubr.msk.f32.gmra.mrb[90].mxu0 %vm372_vm0, %v2871_v20 }
 0x233   : > { %1221 = vmatprep.mubr.f32.mxu0 %v2418_v5 }
 0x234   : > { %1973 = vmatmul.mubr.msk.f32.gmra.mrb[88].mxu1 %vm372_vm0, %v2859_v18 }
 0x235   : > { %1472 = vmatprep.mubr.f32.mxu1 %v2418_v5 }
 0x236   : > { %1943 = vmatmul.mubr.msk.f32.gmra.mrb[92].mxu0 %vm372_vm0, %v2883_v22 }
 0x237   : > { %1227 = vmatprep.mubr.f32.mxu0 %v2418_v5 }
 0x238   : > { %1974 = vmatmul.mubr.msk.f32.gmra.mrb[90].mxu1 %vm372_vm0, %v2871_v20 }
 0x239   : > { %1478 = vmatprep.mubr.f32.mxu1 %v2418_v5 }
 0x23a   : > { %1944 = vmatmul.mubr.msk.f32.gmra.mrb[94].mxu0 %vm372_vm0, %v2895_v24 }
 0x23b   : > { %1233 = vmatprep.mubr.f32.mxu0 %v2418_v5 }
 0x23c   : > { %1975 = vmatmul.mubr.msk.f32.gmra.mrb[92].mxu1 %vm372_vm0, %v2883_v22 }
 0x23d   : > { %1484 = vmatprep.mubr.f32.mxu1 %v2418_v5 }
 0x23e   : > { %1945 = vmatmul.mubr.msk.f32.gmra.mrb[96].mxu0 %vm372_vm0, %v2907_v26 }
 0x23f   : > { %1239 = vmatprep.mubr.f32.mxu0 %v2418_v5 }
 0x240   : > { %1976 = vmatmul.mubr.msk.f32.gmra.mrb[94].mxu1 %vm372_vm0, %v2895_v24 }
 0x241   : > { %1490 = vmatprep.mubr.f32.mxu1 %v2418_v5 }
 0x242   : > { %1946 = vmatmul.mubr.msk.f32.gmra.mrb[98].mxu0 %vm372_vm0, %v2919_v28 }
 0x243   : > { %1245 = vmatprep.mubr.f32.mxu0 %v2418_v5 }
 0x244   : > { %1977 = vmatmul.mubr.msk.f32.gmra.mrb[96].mxu1 %vm372_vm0, %v2907_v26 }
 0x245   : > { %1496 = vmatprep.mubr.f32.mxu1 %v2418_v5 }
 0x246   : > { %1947 = vmatmul.mubr.msk.f32.gmra.mrb[100].mxu0 %vm372_vm0, %v2928_v29 }
 0x248   : > { %1978 = vmatmul.mubr.msk.f32.gmra.mrb[98].mxu1 %vm372_vm0, %v2919_v28 }
 0x249   : > { %1502 = vmatprep.mubr.f32.mxu1 %v2418_v5 }
 0x24c   : > { %1979 = vmatmul.mubr.msk.f32.gmra.mrb[100].mxu1 %vm372_vm0, %v2928_v29 }
 0x25f   : > { %v894_v30 = vpop.f32.mrb[4].mxu1  ;;  %v804_v31 = vpop.f32.mrb[8].mxu0 }
 0x260   : > { %1599 = vst [vmem:[%s3126_s4 + $0x2d0] sm:$0xff] %v894_v30  ;;  %v896_v5 = vpop.f32.mrb[5].mxu1  ;;  %1509 = vst [vmem:[%s3126_s4] sm:$0xff] %v804_v31  ;;  %v806_v32 = vpop.f32.mrb[9].mxu0 }
 0x261   : > { %1600 = vst [vmem:[%s3126_s4 + $0x2d8] sm:$0xff] %v896_v5  ;;  %1510 = vst [vmem:[%s3126_s4 + $0x8] sm:$0xff] %v806_v32 }
 0x263   : > { %v900_v33 = vpop.f32.mrb[6].mxu1 }
 0x264   : > { %1605 = vst [vmem:[%s3126_s4 + $0x300] sm:$0xff] %v900_v33  ;;  %v902_v34 = vpop.f32.mrb[7].mxu1 }
 0x265   : > { %1606 = vst [vmem:[%s3126_s4 + $0x308] sm:$0xff] %v902_v34  ;;  %v810_v35 = vpop.f32.mrb[10].mxu0 }
 0x266   : > { %1515 = vst [vmem:[%s3126_s4 + $0x30] sm:$0xff] %v810_v35  ;;  %v812_v36 = vpop.f32.mrb[11].mxu0 }
 0x267   : > { %v906_v37 = vpop.f32.mrb[8].mxu1  ;;  %1516 = vst [vmem:[%s3126_s4 + $0x38] sm:$0xff] %v812_v36 }
 0x268   : > { %1611 = vst [vmem:[%s3126_s4 + $0x330] sm:$0xff] %v906_v37  ;;  %v908_v38 = vpop.f32.mrb[9].mxu1 }
 0x269   : > { %1612 = vst [vmem:[%s3126_s4 + $0x338] sm:$0xff] %v908_v38  ;;  %v816_v39 = vpop.f32.mrb[12].mxu0 }
 0x26a   : > { %1521 = vst [vmem:[%s3126_s4 + $0x60] sm:$0xff] %v816_v39  ;;  %v818_v40 = vpop.f32.mrb[13].mxu0 }
 0x26b   : > { %v912_v41 = vpop.f32.mrb[10].mxu1  ;;  %1522 = vst [vmem:[%s3126_s4 + $0x68] sm:$0xff] %v818_v40 }
 0x26c   : > { %1617 = vst [vmem:[%s3126_s4 + $0x360] sm:$0xff] %v912_v41  ;;  %v914_v42 = vpop.f32.mrb[11].mxu1 }
 0x26d   : > { %1618 = vst [vmem:[%s3126_s4 + $0x368] sm:$0xff] %v914_v42  ;;  %v822_v43 = vpop.f32.mrb[14].mxu0 }
 0x26e   : > { %1527 = vst [vmem:[%s3126_s4 + $0x90] sm:$0xff] %v822_v43  ;;  %v824_v44 = vpop.f32.mrb[15].mxu0 }
 0x26f   : > { %v918_v45 = vpop.f32.mrb[12].mxu1  ;;  %1528 = vst [vmem:[%s3126_s4 + $0x98] sm:$0xff] %v824_v44 }
 0x270   : > { %1623 = vst [vmem:[%s3126_s4 + $0x390] sm:$0xff] %v918_v45  ;;  %v920_v46 = vpop.f32.mrb[13].mxu1 }
 0x271   : > { %1624 = vst [vmem:[%s3126_s4 + $0x398] sm:$0xff] %v920_v46  ;;  %v828_v47 = vpop.f32.mrb[16].mxu0 }
 0x272   : > { %1533 = vst [vmem:[%s3126_s4 + $0xc0] sm:$0xff] %v828_v47  ;;  %v830_v48 = vpop.f32.mrb[17].mxu0 }
 0x273   : > { %v924_v49 = vpop.f32.mrb[14].mxu1  ;;  %1534 = vst [vmem:[%s3126_s4 + $0xc8] sm:$0xff] %v830_v48 }
 0x274   : > { %1629 = vst [vmem:[%s3126_s4 + $0x3c0] sm:$0xff] %v924_v49  ;;  %v926_v50 = vpop.f32.mrb[15].mxu1 }
 0x275   : > { %1630 = vst [vmem:[%s3126_s4 + $0x3c8] sm:$0xff] %v926_v50  ;;  %v834_v51 = vpop.f32.mrb[18].mxu0 }
 0x276   : > { %1539 = vst [vmem:[%s3126_s4 + $0xf0] sm:$0xff] %v834_v51  ;;  %v836_v52 = vpop.f32.mrb[19].mxu0 }
 0x277   : > { %v930_v53 = vpop.f32.mrb[16].mxu1  ;;  %1540 = vst [vmem:[%s3126_s4 + $0xf8] sm:$0xff] %v836_v52 }
 0x278   : > { %1635 = vst [vmem:[%s3126_s4 + $0x3f0] sm:$0xff] %v930_v53  ;;  %v932_v54 = vpop.f32.mrb[17].mxu1 }
 0x279   : > { %1636 = vst [vmem:[%s3126_s4 + $0x3f8] sm:$0xff] %v932_v54  ;;  %v840_v55 = vpop.f32.mrb[20].mxu0 }
 0x27a   : > { %1545 = vst [vmem:[%s3126_s4 + $0x120] sm:$0xff] %v840_v55  ;;  %v842_v56 = vpop.f32.mrb[21].mxu0 }
 0x27b   : > { %v936_v57 = vpop.f32.mrb[18].mxu1  ;;  %1546 = vst [vmem:[%s3126_s4 + $0x128] sm:$0xff] %v842_v56 }
 0x27c   : > { %1641 = vst [vmem:[%s3126_s4 + $0x420] sm:$0xff] %v936_v57  ;;  %v938_v58 = vpop.f32.mrb[19].mxu1 }
 0x27d   : > { %1642 = vst [vmem:[%s3126_s4 + $0x428] sm:$0xff] %v938_v58  ;;  %v846_v59 = vpop.f32.mrb[22].mxu0 }
 0x27e   : > { %1551 = vst [vmem:[%s3126_s4 + $0x150] sm:$0xff] %v846_v59  ;;  %v848_v60 = vpop.f32.mrb[23].mxu0 }
 0x27f   : > { %v942_v61 = vpop.f32.mrb[20].mxu1  ;;  %1552 = vst [vmem:[%s3126_s4 + $0x158] sm:$0xff] %v848_v60 }
 0x280   : > { %1647 = vst [vmem:[%s3126_s4 + $0x450] sm:$0xff] %v942_v61  ;;  %v944_v62 = vpop.f32.mrb[21].mxu1 }
 0x281   : > { %1648 = vst [vmem:[%s3126_s4 + $0x458] sm:$0xff] %v944_v62  ;;  %v852_v63 = vpop.f32.mrb[24].mxu0 }
 0x282   : > { %1557 = vst [vmem:[%s3126_s4 + $0x180] sm:$0xff] %v852_v63  ;;  %v854_v0 = vpop.f32.mrb[25].mxu0 }
 0x283   : > { %v948_v1 = vpop.f32.mrb[22].mxu1  ;;  %1558 = vst [vmem:[%s3126_s4 + $0x188] sm:$0xff] %v854_v0 }
 0x284   : > { %1653 = vst [vmem:[%s3126_s4 + $0x480] sm:$0xff] %v948_v1  ;;  %v950_v2 = vpop.f32.mrb[23].mxu1 }
 0x285   : > { %1654 = vst [vmem:[%s3126_s4 + $0x488] sm:$0xff] %v950_v2  ;;  %v858_v3 = vpop.f32.mrb[26].mxu0 }
 0x286   : > { %1563 = vst [vmem:[%s3126_s4 + $0x1b0] sm:$0xff] %v858_v3  ;;  %v860_v4 = vpop.f32.mrb[27].mxu0 }
 0x287   : > { %v954_v6 = vpop.f32.mrb[24].mxu1  ;;  %1564 = vst [vmem:[%s3126_s4 + $0x1b8] sm:$0xff] %v860_v4 }
 0x288   : > { %1659 = vst [vmem:[%s3126_s4 + $0x4b0] sm:$0xff] %v954_v6  ;;  %v956_v7 = vpop.f32.mrb[25].mxu1 }
 0x289   : > { %1660 = vst [vmem:[%s3126_s4 + $0x4b8] sm:$0xff] %v956_v7  ;;  %v864_v8 = vpop.f32.mrb[28].mxu0 }
 0x28a   : > { %1569 = vst [vmem:[%s3126_s4 + $0x1e0] sm:$0xff] %v864_v8  ;;  %v866_v9 = vpop.f32.mrb[29].mxu0 }
 0x28b   : > { %v960_v10 = vpop.f32.mrb[26].mxu1  ;;  %1570 = vst [vmem:[%s3126_s4 + $0x1e8] sm:$0xff] %v866_v9 }
 0x28c   : > { %1665 = vst [vmem:[%s3126_s4 + $0x4e0] sm:$0xff] %v960_v10  ;;  %v962_v11 = vpop.f32.mrb[27].mxu1 }
 0x28d   : > { %1666 = vst [vmem:[%s3126_s4 + $0x4e8] sm:$0xff] %v962_v11  ;;  %v870_v12 = vpop.f32.mrb[30].mxu0 }
 0x28e   : > { %1575 = vst [vmem:[%s3126_s4 + $0x210] sm:$0xff] %v870_v12  ;;  %v872_v13 = vpop.f32.mrb[31].mxu0 }
 0x28f   : > { %v966_v14 = vpop.f32.mrb[28].mxu1  ;;  %1576 = vst [vmem:[%s3126_s4 + $0x218] sm:$0xff] %v872_v13 }
 0x290   : > { %1671 = vst [vmem:[%s3126_s4 + $0x510] sm:$0xff] %v966_v14  ;;  %v968_v15 = vpop.f32.mrb[29].mxu1 }
 0x291   : > { %1672 = vst [vmem:[%s3126_s4 + $0x518] sm:$0xff] %v968_v15  ;;  %v876_v16 = vpop.f32.mrb[32].mxu0 }
 0x292   : > { %1581 = vst [vmem:[%s3126_s4 + $0x240] sm:$0xff] %v876_v16  ;;  %v878_v17 = vpop.f32.mrb[33].mxu0 }
 0x293   : > { %v972_v18 = vpop.f32.mrb[30].mxu1  ;;  %1582 = vst [vmem:[%s3126_s4 + $0x248] sm:$0xff] %v878_v17 }
 0x294   : > { %1677 = vst [vmem:[%s3126_s4 + $0x540] sm:$0xff] %v972_v18  ;;  %v974_v19 = vpop.f32.mrb[31].mxu1 }
 0x295   : > { %1678 = vst [vmem:[%s3126_s4 + $0x548] sm:$0xff] %v974_v19  ;;  %v882_v20 = vpop.f32.mrb[34].mxu0 }
 0x296   : > { %1587 = vst [vmem:[%s3126_s4 + $0x270] sm:$0xff] %v882_v20  ;;  %v884_v21 = vpop.f32.mrb[35].mxu0 }
 0x297   : > { %v978_v22 = vpop.f32.mrb[32].mxu1  ;;  %1588 = vst [vmem:[%s3126_s4 + $0x278] sm:$0xff] %v884_v21 }
 0x298   : > { %1683 = vst [vmem:[%s3126_s4 + $0x570] sm:$0xff] %v978_v22  ;;  %v980_v23 = vpop.f32.mrb[33].mxu1 }
 0x299   : > { %1684 = vst [vmem:[%s3126_s4 + $0x578] sm:$0xff] %v980_v23  ;;  %v888_v24 = vpop.f32.mrb[36].mxu0 }
 0x29a   : > { %1593 = vst [vmem:[%s3126_s4 + $0x2a0] sm:$0xff] %v888_v24  ;;  %v890_v25 = vpop.f32.mrb[37].mxu0 }
 0x29b   : > { %v984_v26 = vpop.f32.mrb[34].mxu1  ;;  %1594 = vst [vmem:[%s3126_s4 + $0x2a8] sm:$0xff] %v890_v25 }
 0x29c   : > { %1689 = vst [vmem:[%s3126_s4 + $0x5a0] sm:$0xff] %v984_v26  ;;  %v986_v27 = vpop.f32.mrb[35].mxu1 }
 0x29d   : > { %1690 = vst [vmem:[%s3126_s4 + $0x5a8] sm:$0xff] %v986_v27  ;;  %v1061_v28 = vpop.f32.mrb[38].mxu0 }
 0x29e   : > { %1511 = vst [vmem:[%s3126_s4 + $0x10] sm:$0xff] %v1061_v28  ;;  %v1063_v29 = vpop.f32.mrb[39].mxu0 }
 0x29f   : > { %v990_v30 = vpop.f32.mrb[36].mxu1  ;;  %1512 = vst [vmem:[%s3126_s4 + $0x18] sm:$0xff] %v1063_v29 }
 0x2a0   : > { %1695 = vst [vmem:[%s3126_s4 + $0x5d0] sm:$0xff] %v990_v30  ;;  %v992_v31 = vpop.f32.mrb[37].mxu1 }
 0x2a1   : > { %1696 = vst [vmem:[%s3126_s4 + $0x5d8] sm:$0xff] %v992_v31  ;;  %v1067_v5 = vpop.f32.mrb[40].mxu0 }
 0x2a2   : > { %1517 = vst [vmem:[%s3126_s4 + $0x40] sm:$0xff] %v1067_v5  ;;  %v1069_v32 = vpop.f32.mrb[41].mxu0 }
 0x2a3   : > { %v1318_v33 = vpop.f32.mrb[38].mxu1  ;;  %1518 = vst [vmem:[%s3126_s4 + $0x48] sm:$0xff] %v1069_v32 }
 0x2a4   : > { %1513 = vst [vmem:[%s3126_s4 + $0x20] sm:$0xff] %v1318_v33  ;;  %v1320_v34 = vpop.f32.mrb[39].mxu1 }
 0x2a5   : > { %1514 = vst [vmem:[%s3126_s4 + $0x28] sm:$0xff] %v1320_v34  ;;  %v1073_v35 = vpop.f32.mrb[42].mxu0 }
 0x2a6   : > { %1523 = vst [vmem:[%s3126_s4 + $0x70] sm:$0xff] %v1073_v35  ;;  %v1075_v36 = vpop.f32.mrb[43].mxu0 }
 0x2a7   : > { %v1324_v37 = vpop.f32.mrb[40].mxu1  ;;  %1524 = vst [vmem:[%s3126_s4 + $0x78] sm:$0xff] %v1075_v36 }
 0x2a8   : > { %1519 = vst [vmem:[%s3126_s4 + $0x50] sm:$0xff] %v1324_v37  ;;  %v1326_v38 = vpop.f32.mrb[41].mxu1 }
 0x2a9   : > { %1520 = vst [vmem:[%s3126_s4 + $0x58] sm:$0xff] %v1326_v38  ;;  %v1079_v39 = vpop.f32.mrb[44].mxu0 }
 0x2aa   : > { %1529 = vst [vmem:[%s3126_s4 + $0xa0] sm:$0xff] %v1079_v39  ;;  %v1081_v40 = vpop.f32.mrb[45].mxu0 }
 0x2ab   : > { %v1330_v41 = vpop.f32.mrb[42].mxu1  ;;  %1530 = vst [vmem:[%s3126_s4 + $0xa8] sm:$0xff] %v1081_v40 }
 0x2ac   : > { %1525 = vst [vmem:[%s3126_s4 + $0x80] sm:$0xff] %v1330_v41  ;;  %v1332_v42 = vpop.f32.mrb[43].mxu1 }
 0x2ad   : > { %1526 = vst [vmem:[%s3126_s4 + $0x88] sm:$0xff] %v1332_v42  ;;  %v1085_v43 = vpop.f32.mrb[46].mxu0 }
 0x2ae   : > { %1535 = vst [vmem:[%s3126_s4 + $0xd0] sm:$0xff] %v1085_v43  ;;  %v1087_v44 = vpop.f32.mrb[47].mxu0 }
 0x2af   : > { %v1336_v45 = vpop.f32.mrb[44].mxu1  ;;  %1536 = vst [vmem:[%s3126_s4 + $0xd8] sm:$0xff] %v1087_v44 }
 0x2b0   : > { %1531 = vst [vmem:[%s3126_s4 + $0xb0] sm:$0xff] %v1336_v45  ;;  %v1338_v46 = vpop.f32.mrb[45].mxu1 }
 0x2b1   : > { %1532 = vst [vmem:[%s3126_s4 + $0xb8] sm:$0xff] %v1338_v46  ;;  %v1091_v47 = vpop.f32.mrb[48].mxu0 }
 0x2b2   : > { %1541 = vst [vmem:[%s3126_s4 + $0x100] sm:$0xff] %v1091_v47  ;;  %v1093_v48 = vpop.f32.mrb[49].mxu0 }
 0x2b3   : > { %v1342_v49 = vpop.f32.mrb[46].mxu1  ;;  %1542 = vst [vmem:[%s3126_s4 + $0x108] sm:$0xff] %v1093_v48 }
 0x2b4   : > { %1537 = vst [vmem:[%s3126_s4 + $0xe0] sm:$0xff] %v1342_v49  ;;  %v1344_v50 = vpop.f32.mrb[47].mxu1 }
 0x2b5   : > { %1538 = vst [vmem:[%s3126_s4 + $0xe8] sm:$0xff] %v1344_v50  ;;  %v1097_v51 = vpop.f32.mrb[50].mxu0 }
 0x2b6   : > { %1547 = vst [vmem:[%s3126_s4 + $0x130] sm:$0xff] %v1097_v51  ;;  %v1099_v52 = vpop.f32.mrb[51].mxu0 }
 0x2b7   : > { %v1348_v53 = vpop.f32.mrb[48].mxu1  ;;  %1548 = vst [vmem:[%s3126_s4 + $0x138] sm:$0xff] %v1099_v52 }
 0x2b8   : > { %1543 = vst [vmem:[%s3126_s4 + $0x110] sm:$0xff] %v1348_v53  ;;  %v1350_v54 = vpop.f32.mrb[49].mxu1 }
 0x2b9   : > { %1544 = vst [vmem:[%s3126_s4 + $0x118] sm:$0xff] %v1350_v54  ;;  %v1103_v55 = vpop.f32.mrb[52].mxu0 }
 0x2ba   : > { %1553 = vst [vmem:[%s3126_s4 + $0x160] sm:$0xff] %v1103_v55  ;;  %v1105_v56 = vpop.f32.mrb[53].mxu0 }
 0x2bb   : > { %v1354_v57 = vpop.f32.mrb[50].mxu1  ;;  %1554 = vst [vmem:[%s3126_s4 + $0x168] sm:$0xff] %v1105_v56 }
 0x2bc   : > { %1549 = vst [vmem:[%s3126_s4 + $0x140] sm:$0xff] %v1354_v57  ;;  %v1356_v58 = vpop.f32.mrb[51].mxu1 }
 0x2bd   : > { %1550 = vst [vmem:[%s3126_s4 + $0x148] sm:$0xff] %v1356_v58  ;;  %v1109_v59 = vpop.f32.mrb[54].mxu0 }
 0x2be   : > { %1559 = vst [vmem:[%s3126_s4 + $0x190] sm:$0xff] %v1109_v59  ;;  %v1111_v60 = vpop.f32.mrb[55].mxu0 }
 0x2bf   : > { %v1360_v61 = vpop.f32.mrb[52].mxu1  ;;  %1560 = vst [vmem:[%s3126_s4 + $0x198] sm:$0xff] %v1111_v60 }
 0x2c0   : > { %1555 = vst [vmem:[%s3126_s4 + $0x170] sm:$0xff] %v1360_v61  ;;  %v1362_v62 = vpop.f32.mrb[53].mxu1 }
 0x2c1   : > { %1556 = vst [vmem:[%s3126_s4 + $0x178] sm:$0xff] %v1362_v62  ;;  %v1115_v63 = vpop.f32.mrb[56].mxu0 }
 0x2c2   : > { %1565 = vst [vmem:[%s3126_s4 + $0x1c0] sm:$0xff] %v1115_v63  ;;  %v1117_v0 = vpop.f32.mrb[57].mxu0 }
 0x2c3   : > { %v1366_v1 = vpop.f32.mrb[54].mxu1  ;;  %1566 = vst [vmem:[%s3126_s4 + $0x1c8] sm:$0xff] %v1117_v0 }
 0x2c4   : > { %1561 = vst [vmem:[%s3126_s4 + $0x1a0] sm:$0xff] %v1366_v1  ;;  %v1368_v2 = vpop.f32.mrb[55].mxu1 }
 0x2c5   : > { %1562 = vst [vmem:[%s3126_s4 + $0x1a8] sm:$0xff] %v1368_v2  ;;  %v1121_v3 = vpop.f32.mrb[58].mxu0 }
 0x2c6   : > { %1571 = vst [vmem:[%s3126_s4 + $0x1f0] sm:$0xff] %v1121_v3  ;;  %v1123_v4 = vpop.f32.mrb[59].mxu0 }
 0x2c7   : > { %v1372_v6 = vpop.f32.mrb[56].mxu1  ;;  %1572 = vst [vmem:[%s3126_s4 + $0x1f8] sm:$0xff] %v1123_v4 }
 0x2c8   : > { %1567 = vst [vmem:[%s3126_s4 + $0x1d0] sm:$0xff] %v1372_v6  ;;  %v1374_v7 = vpop.f32.mrb[57].mxu1 }
 0x2c9   : > { %1568 = vst [vmem:[%s3126_s4 + $0x1d8] sm:$0xff] %v1374_v7  ;;  %v1127_v8 = vpop.f32.mrb[60].mxu0 }
 0x2ca   : > { %1577 = vst [vmem:[%s3126_s4 + $0x220] sm:$0xff] %v1127_v8  ;;  %v1129_v9 = vpop.f32.mrb[61].mxu0 }
 0x2cb   : > { %v1378_v10 = vpop.f32.mrb[58].mxu1  ;;  %1578 = vst [vmem:[%s3126_s4 + $0x228] sm:$0xff] %v1129_v9 }
 0x2cc   : > { %1573 = vst [vmem:[%s3126_s4 + $0x200] sm:$0xff] %v1378_v10  ;;  %v1380_v11 = vpop.f32.mrb[59].mxu1 }
 0x2cd   : > { %1574 = vst [vmem:[%s3126_s4 + $0x208] sm:$0xff] %v1380_v11  ;;  %v1133_v12 = vpop.f32.mrb[62].mxu0 }
 0x2ce   : > { %1583 = vst [vmem:[%s3126_s4 + $0x250] sm:$0xff] %v1133_v12  ;;  %v1135_v13 = vpop.f32.mrb[63].mxu0 }
 0x2cf   : > { %v1384_v14 = vpop.f32.mrb[60].mxu1  ;;  %1584 = vst [vmem:[%s3126_s4 + $0x258] sm:$0xff] %v1135_v13 }
 0x2d0   : > { %1579 = vst [vmem:[%s3126_s4 + $0x230] sm:$0xff] %v1384_v14  ;;  %v1386_v15 = vpop.f32.mrb[61].mxu1 }
 0x2d1   : > { %1580 = vst [vmem:[%s3126_s4 + $0x238] sm:$0xff] %v1386_v15  ;;  %v1139_v16 = vpop.f32.mrb[64].mxu0 }
 0x2d2   : > { %1589 = vst [vmem:[%s3126_s4 + $0x280] sm:$0xff] %v1139_v16  ;;  %v1141_v17 = vpop.f32.mrb[65].mxu0 }
 0x2d3   : > { %v1390_v18 = vpop.f32.mrb[62].mxu1  ;;  %1590 = vst [vmem:[%s3126_s4 + $0x288] sm:$0xff] %v1141_v17 }
 0x2d4   : > { %1585 = vst [vmem:[%s3126_s4 + $0x260] sm:$0xff] %v1390_v18  ;;  %v1392_v19 = vpop.f32.mrb[63].mxu1 }
 0x2d5   : > { %1586 = vst [vmem:[%s3126_s4 + $0x268] sm:$0xff] %v1392_v19  ;;  %v1145_v20 = vpop.f32.mrb[66].mxu0 }
 0x2d6   : > { %1595 = vst [vmem:[%s3126_s4 + $0x2b0] sm:$0xff] %v1145_v20  ;;  %v1147_v21 = vpop.f32.mrb[67].mxu0 }
 0x2d7   : > { %v1396_v22 = vpop.f32.mrb[64].mxu1  ;;  %1596 = vst [vmem:[%s3126_s4 + $0x2b8] sm:$0xff] %v1147_v21 }
 0x2d8   : > { %1591 = vst [vmem:[%s3126_s4 + $0x290] sm:$0xff] %v1396_v22  ;;  %v1398_v23 = vpop.f32.mrb[65].mxu1 }
 0x2d9   : > { %1592 = vst [vmem:[%s3126_s4 + $0x298] sm:$0xff] %v1398_v23  ;;  %v1151_v24 = vpop.f32.mrb[68].mxu0 }
 0x2da   : > { %1601 = vst [vmem:[%s3126_s4 + $0x2e0] sm:$0xff] %v1151_v24  ;;  %v1153_v25 = vpop.f32.mrb[69].mxu0 }
 0x2db   : > { %v1402_v26 = vpop.f32.mrb[66].mxu1  ;;  %1602 = vst [vmem:[%s3126_s4 + $0x2e8] sm:$0xff] %v1153_v25 }
 0x2dc   : > { %1597 = vst [vmem:[%s3126_s4 + $0x2c0] sm:$0xff] %v1402_v26  ;;  %v1404_v27 = vpop.f32.mrb[67].mxu1 }
 0x2dd   : > { %1598 = vst [vmem:[%s3126_s4 + $0x2c8] sm:$0xff] %v1404_v27  ;;  %v1157_v28 = vpop.f32.mrb[70].mxu0 }
 0x2de   : > { %1607 = vst [vmem:[%s3126_s4 + $0x310] sm:$0xff] %v1157_v28  ;;  %v1159_v29 = vpop.f32.mrb[71].mxu0 }
 0x2df   : > { %v1408_v30 = vpop.f32.mrb[68].mxu1  ;;  %1608 = vst [vmem:[%s3126_s4 + $0x318] sm:$0xff] %v1159_v29 }
 0x2e0   : > { %1603 = vst [vmem:[%s3126_s4 + $0x2f0] sm:$0xff] %v1408_v30  ;;  %v1410_v31 = vpop.f32.mrb[69].mxu1 }
 0x2e1   : > { %1604 = vst [vmem:[%s3126_s4 + $0x2f8] sm:$0xff] %v1410_v31  ;;  %v1163_v5 = vpop.f32.mrb[72].mxu0 }
 0x2e2   : > { %1613 = vst [vmem:[%s3126_s4 + $0x340] sm:$0xff] %v1163_v5  ;;  %v1165_v32 = vpop.f32.mrb[73].mxu0 }
 0x2e3   : > { %v1414_v33 = vpop.f32.mrb[70].mxu1  ;;  %1614 = vst [vmem:[%s3126_s4 + $0x348] sm:$0xff] %v1165_v32 }
 0x2e4   : > { %1609 = vst [vmem:[%s3126_s4 + $0x320] sm:$0xff] %v1414_v33  ;;  %v1416_v34 = vpop.f32.mrb[71].mxu1 }
 0x2e5   : > { %1610 = vst [vmem:[%s3126_s4 + $0x328] sm:$0xff] %v1416_v34  ;;  %v1169_v35 = vpop.f32.mrb[74].mxu0 }
 0x2e6   : > { %1619 = vst [vmem:[%s3126_s4 + $0x370] sm:$0xff] %v1169_v35  ;;  %v1171_v36 = vpop.f32.mrb[75].mxu0 }
 0x2e7   : > { %v1420_v37 = vpop.f32.mrb[72].mxu1  ;;  %1620 = vst [vmem:[%s3126_s4 + $0x378] sm:$0xff] %v1171_v36 }
 0x2e8   : > { %1615 = vst [vmem:[%s3126_s4 + $0x350] sm:$0xff] %v1420_v37  ;;  %v1422_v38 = vpop.f32.mrb[73].mxu1 }
 0x2e9   : > { %1616 = vst [vmem:[%s3126_s4 + $0x358] sm:$0xff] %v1422_v38  ;;  %v1175_v39 = vpop.f32.mrb[76].mxu0 }
 0x2ea   : > { %1625 = vst [vmem:[%s3126_s4 + $0x3a0] sm:$0xff] %v1175_v39  ;;  %v1177_v40 = vpop.f32.mrb[77].mxu0 }
 0x2eb   : > { %v1426_v41 = vpop.f32.mrb[74].mxu1  ;;  %1626 = vst [vmem:[%s3126_s4 + $0x3a8] sm:$0xff] %v1177_v40 }
 0x2ec   : > { %1621 = vst [vmem:[%s3126_s4 + $0x380] sm:$0xff] %v1426_v41  ;;  %v1428_v42 = vpop.f32.mrb[75].mxu1 }
 0x2ed   : > { %1622 = vst [vmem:[%s3126_s4 + $0x388] sm:$0xff] %v1428_v42  ;;  %v1181_v43 = vpop.f32.mrb[78].mxu0 }
 0x2ee   : > { %1631 = vst [vmem:[%s3126_s4 + $0x3d0] sm:$0xff] %v1181_v43  ;;  %v1183_v44 = vpop.f32.mrb[79].mxu0 }
 0x2ef   : > { %v1432_v45 = vpop.f32.mrb[76].mxu1  ;;  %1632 = vst [vmem:[%s3126_s4 + $0x3d8] sm:$0xff] %v1183_v44 }
 0x2f0   : > { %1627 = vst [vmem:[%s3126_s4 + $0x3b0] sm:$0xff] %v1432_v45  ;;  %v1434_v46 = vpop.f32.mrb[77].mxu1 }
 0x2f1   : > { %1628 = vst [vmem:[%s3126_s4 + $0x3b8] sm:$0xff] %v1434_v46  ;;  %v1187_v47 = vpop.f32.mrb[80].mxu0 }
 0x2f2   : > { %1637 = vst [vmem:[%s3126_s4 + $0x400] sm:$0xff] %v1187_v47  ;;  %v1189_v48 = vpop.f32.mrb[81].mxu0 }
 0x2f3   : > { %v1438_v49 = vpop.f32.mrb[78].mxu1  ;;  %1638 = vst [vmem:[%s3126_s4 + $0x408] sm:$0xff] %v1189_v48 }
 0x2f4   : > { %1633 = vst [vmem:[%s3126_s4 + $0x3e0] sm:$0xff] %v1438_v49  ;;  %v1440_v50 = vpop.f32.mrb[79].mxu1 }
 0x2f5   : > { %1634 = vst [vmem:[%s3126_s4 + $0x3e8] sm:$0xff] %v1440_v50  ;;  %v1193_v51 = vpop.f32.mrb[82].mxu0 }
 0x2f6   : > { %1643 = vst [vmem:[%s3126_s4 + $0x430] sm:$0xff] %v1193_v51  ;;  %v1195_v52 = vpop.f32.mrb[83].mxu0 }
 0x2f7   : > { %v1444_v53 = vpop.f32.mrb[80].mxu1  ;;  %1644 = vst [vmem:[%s3126_s4 + $0x438] sm:$0xff] %v1195_v52 }
 0x2f8   : > { %1639 = vst [vmem:[%s3126_s4 + $0x410] sm:$0xff] %v1444_v53  ;;  %v1446_v54 = vpop.f32.mrb[81].mxu1 }
 0x2f9   : > { %1640 = vst [vmem:[%s3126_s4 + $0x418] sm:$0xff] %v1446_v54  ;;  %v1199_v55 = vpop.f32.mrb[84].mxu0 }
 0x2fa   : > { %1649 = vst [vmem:[%s3126_s4 + $0x460] sm:$0xff] %v1199_v55  ;;  %v1201_v56 = vpop.f32.mrb[85].mxu0 }
 0x2fb   : > { %v1450_v57 = vpop.f32.mrb[82].mxu1  ;;  %1650 = vst [vmem:[%s3126_s4 + $0x468] sm:$0xff] %v1201_v56 }
 0x2fc   : > { %1645 = vst [vmem:[%s3126_s4 + $0x440] sm:$0xff] %v1450_v57  ;;  %v1452_v58 = vpop.f32.mrb[83].mxu1 }
 0x2fd   : > { %1646 = vst [vmem:[%s3126_s4 + $0x448] sm:$0xff] %v1452_v58  ;;  %v1205_v59 = vpop.f32.mrb[86].mxu0 }
 0x2fe   : > { %1655 = vst [vmem:[%s3126_s4 + $0x490] sm:$0xff] %v1205_v59  ;;  %v1207_v60 = vpop.f32.mrb[87].mxu0 }
 0x2ff   : > { %v1456_v61 = vpop.f32.mrb[84].mxu1  ;;  %1656 = vst [vmem:[%s3126_s4 + $0x498] sm:$0xff] %v1207_v60 }
 0x300   : > { %1651 = vst [vmem:[%s3126_s4 + $0x470] sm:$0xff] %v1456_v61  ;;  %v1458_v62 = vpop.f32.mrb[85].mxu1 }
 0x301   : > { %1652 = vst [vmem:[%s3126_s4 + $0x478] sm:$0xff] %v1458_v62  ;;  %v1211_v63 = vpop.f32.mrb[88].mxu0 }
 0x302   : > { %1661 = vst [vmem:[%s3126_s4 + $0x4c0] sm:$0xff] %v1211_v63  ;;  %v1213_v0 = vpop.f32.mrb[89].mxu0 }
 0x303   : > { %v1462_v1 = vpop.f32.mrb[86].mxu1  ;;  %1662 = vst [vmem:[%s3126_s4 + $0x4c8] sm:$0xff] %v1213_v0 }
 0x304   : > { %1657 = vst [vmem:[%s3126_s4 + $0x4a0] sm:$0xff] %v1462_v1  ;;  %v1464_v2 = vpop.f32.mrb[87].mxu1 }
 0x305   : > { %1658 = vst [vmem:[%s3126_s4 + $0x4a8] sm:$0xff] %v1464_v2  ;;  %v1217_v3 = vpop.f32.mrb[90].mxu0 }
 0x306   : > { %1667 = vst [vmem:[%s3126_s4 + $0x4f0] sm:$0xff] %v1217_v3  ;;  %v1219_v4 = vpop.f32.mrb[91].mxu0 }
 0x307   : > { %v1468_v6 = vpop.f32.mrb[88].mxu1  ;;  %1668 = vst [vmem:[%s3126_s4 + $0x4f8] sm:$0xff] %v1219_v4 }
 0x308   : > { %1663 = vst [vmem:[%s3126_s4 + $0x4d0] sm:$0xff] %v1468_v6  ;;  %v1470_v7 = vpop.f32.mrb[89].mxu1 }
 0x309   : > { %1664 = vst [vmem:[%s3126_s4 + $0x4d8] sm:$0xff] %v1470_v7  ;;  %v1223_v8 = vpop.f32.mrb[92].mxu0 }
 0x30a   : > { %1673 = vst [vmem:[%s3126_s4 + $0x520] sm:$0xff] %v1223_v8  ;;  %v1225_v9 = vpop.f32.mrb[93].mxu0 }
 0x30b   : > { %v1474_v10 = vpop.f32.mrb[90].mxu1  ;;  %1674 = vst [vmem:[%s3126_s4 + $0x528] sm:$0xff] %v1225_v9 }
 0x30c   : > { %1669 = vst [vmem:[%s3126_s4 + $0x500] sm:$0xff] %v1474_v10  ;;  %v1476_v11 = vpop.f32.mrb[91].mxu1 }
 0x30d   : > { %1670 = vst [vmem:[%s3126_s4 + $0x508] sm:$0xff] %v1476_v11  ;;  %v1229_v12 = vpop.f32.mrb[94].mxu0 }
 0x30e   : > { %1679 = vst [vmem:[%s3126_s4 + $0x550] sm:$0xff] %v1229_v12  ;;  %v1231_v13 = vpop.f32.mrb[95].mxu0 }
 0x30f   : > { %v1480_v14 = vpop.f32.mrb[92].mxu1  ;;  %1680 = vst [vmem:[%s3126_s4 + $0x558] sm:$0xff] %v1231_v13 }
 0x310   : > { %1675 = vst [vmem:[%s3126_s4 + $0x530] sm:$0xff] %v1480_v14  ;;  %v1482_v15 = vpop.f32.mrb[93].mxu1 }
 0x311   : > { %1676 = vst [vmem:[%s3126_s4 + $0x538] sm:$0xff] %v1482_v15  ;;  %v1235_v16 = vpop.f32.mrb[96].mxu0 }
 0x312   : > { %1685 = vst [vmem:[%s3126_s4 + $0x580] sm:$0xff] %v1235_v16  ;;  %v1237_v17 = vpop.f32.mrb[97].mxu0 }
 0x313   : > { %v1486_v18 = vpop.f32.mrb[94].mxu1  ;;  %1686 = vst [vmem:[%s3126_s4 + $0x588] sm:$0xff] %v1237_v17 }
 0x314   : > { %1681 = vst [vmem:[%s3126_s4 + $0x560] sm:$0xff] %v1486_v18  ;;  %v1488_v19 = vpop.f32.mrb[95].mxu1 }
 0x315   : > { %1682 = vst [vmem:[%s3126_s4 + $0x568] sm:$0xff] %v1488_v19  ;;  %v1241_v20 = vpop.f32.mrb[98].mxu0 }
 0x316   : > { %1691 = vst [vmem:[%s3126_s4 + $0x5b0] sm:$0xff] %v1241_v20  ;;  %v1243_v21 = vpop.f32.mrb[99].mxu0 }
 0x317   : > { %v1492_v22 = vpop.f32.mrb[96].mxu1  ;;  %1692 = vst [vmem:[%s3126_s4 + $0x5b8] sm:$0xff] %v1243_v21 }
 0x318   : > { %1687 = vst [vmem:[%s3126_s4 + $0x590] sm:$0xff] %v1492_v22  ;;  %v1494_v23 = vpop.f32.mrb[97].mxu1 }
 0x319   : > { %1688 = vst [vmem:[%s3126_s4 + $0x598] sm:$0xff] %v1494_v23  ;;  %v1247_v24 = vpop.f32.mrb[100].mxu0 }
 0x31a   : > { %1697 = vst [vmem:[%s3126_s4 + $0x5e0] sm:$0xff] %v1247_v24  ;;  %v1249_v25 = vpop.f32.mrb[101].mxu0 }
 0x31b   : > { %v1498_v26 = vpop.f32.mrb[98].mxu1  ;;  %1698 = vst [vmem:[%s3126_s4 + $0x5e8] sm:$0xff] %v1249_v25 }
 0x31c   : > { %1693 = vst [vmem:[%s3126_s4 + $0x5c0] sm:$0xff] %v1498_v26  ;;  %v1500_v27 = vpop.f32.mrb[99].mxu1 }
 0x31d   : > { %1694 = vst [vmem:[%s3126_s4 + $0x5c8] sm:$0xff] %v1500_v27 }
 0x31f   : > { %v1504_v28 = vpop.f32.mrb[100].mxu1 }
 0x320   : > { %1699 = vst [vmem:[%s3126_s4 + $0x5f0] sm:$0xff] %v1504_v28  ;;  %v1506_v29 = vpop.f32.mrb[101].mxu1 }
 0x321   : > { %1700 = vst [vmem:[%s3126_s4 + $0x5f8] sm:$0xff] %v1506_v29 }
 0x322   : > { %2271 = shalt.err (!%p2268_p3)
}
 0x323   : > { %s2272_s14 = scalar_lea.hbm %s3325_s16, 24576  ;;  %s2276_s11 = scalar_lea.hbm %s3452_s1, 786432 }
 0x324   : > { %p2273_p9 = scmp.ne.s32.totalorder %s3325_s16, %s2272_s14  ;;  %p2277_p8 = scmp.lt.u32.totalorder %s3325_s16, %s3452_s1 }
 0x325   : > { %p2278_p1 = scmp.lt.u32.totalorder %s2276_s11, %s2272_s14  ;;  %p2280_p0 = scmp.lt.u32.totalorder %s2272_s14, %s3325_s16 }
 0x326   : > { %p2274_p2 = pnand %p2273_p9, %p3453_p7 }
 0x327   : > { %p2279_p11 = por %p2278_p1, %p2277_p8 }
 0x328   : > { %p2275_p10 = pneg %p2274_p2 }
 0x329   : > { %p2281_p12 = por %p2280_p0, %p2279_p11 }
 0x32b   : > { %p2282_p13 = pnand %p2281_p12, %p2275_p10 }
 0x32d   : > { %2285 = shalt.err (!%p2282_p13)
}
 0x32e   : > { %s2420_s10 = smov 768   ;;  %s2421_s24 = smov 48  }
 0x32f   : > { %2032 = dma.vmem_to_hbm [thread:$0]  (%p3453_p7), %s3327_s8, 24576, %s3325_s16, %s3333_s9, %s2420_s10, %s2420_s10, %s2421_s24  }
 0x330 PF: > { %s3454_s17 = sld [smem:[#allocation17_spill]]  ;;  %s3455_s21 = sld [smem:[#allocation21_spill]] }
 0x331   : > { %p2059_p4 = scmp.ge.s32.totalorder %s2408_s30, 2 }
 0x336   : > { %s1735_s7 = sand.u32 1, %s3454_s17   ;;  %p3456_p5 = scmp.ne.s32.totalorder %s3455_s21, 0 }
 0x337   : > { %s1736_s15 = scalar_lea.sflag [#allocation4], %s1735_s7 }
 0x338   : > { %p2049_p6 = pnand %p2059_p4, %p3456_p5 }
 0x33a   : > { %2355 = dma.done.wait (!%p2049_p6), %s1736_s15, 24576  }
 0x33b   : > { %2357 = vsyncadd (!%p2049_p6), %s1736_s15, 4294942720  ;;  %s24_s30 = sadd.s32 1, %s2408_s30   ;;  %s3458_s25 = sld [smem:[#allocation19_spill]] }
 0x33c   : > { %p3362_p3 = scmp.ge.s32.totalorder %s24_s30, 34   ;;  %s3459_s8 = sld [smem:[#allocation22_spill]] }
 0x33d   : > { %s3460_s16 = sld [smem:[#allocation23_spill]]  ;;  %s3461_s9 = sld [smem:[#allocation24_spill]] }
 0x33e   : > { %s3462_s18 = smov %s2364_s19  ;;  %s3463_s19 = smov %s2368_s20 }
 0x33f   : > { %s3464_s20 = smov %s2659_s12  ;;  %s3465_s21 = smov %s2376_s22 }
 0x340   : > { %s3466_s22 = smov %s2380_s23  ;;  %s3467_s23 = smov %s2652_s28 }
 0x341   : > { %s3468_s24 = smov %s2396_s27  ;;  %s3469_s26 = smov %s2404_s29 }
 0x342   : > { %s3470_s27 = smov %s3459_s8  ;;  %23 = sbr.rel (!%p3362_p3) target bundleno = 18 (0x12), region = 103 }
 0x343   : > { %s3471_s28 = smov %s3460_s16  ;;  %s3472_s29 = smov %s3461_s9 }
 0x349   :  { %1741 = vsyncpa [#allocation3], 1 }
 0x34a   :  { %1743 = vsyncpa [#allocation3 + $0x1], 1 }
 0x34b   :  { %1744 = vsyncpa [#allocation10], 1 }
 0x34c   :  { %1745 = vsyncpa [#allocation4], 1 }
 0x34d   :  { %1747 = vsyncpa [#allocation4 + $0x1], 1 }
 0x34e   :  { %1748 = vsyncpa [#allocation5], 1 }
 0x34f   :  { %1750 = vsyncpa [#allocation5 + $0x1], 1 }
 0x350   :  { %1751 = vsyncpa [#allocation7], 1 }

</bundles_post_ra>
